<compile_context>
chip_gen: v7x
topology: tpu7x:2x2x1
jax: 0.10.0
libtpu: 0.0.40
codegen_flags: <defaults>
</compile_context>

<pallas_src>
import jax
import jax.numpy as jnp
from jax.experimental import pallas as pl
from jax.experimental.pallas import tpu as pltpu


def _make_actor_kernel(L, A, C):
    """C == n_conv == n_fc == n_fc1 == 128 (lane width)."""
    t_sig = L - 3   # conv output length for the two length-L signals
    t_c = A - 3     # conv output length for the length-A signal

    def kernel(x_ref, wsm_ref, bias_ref, wfc_ref, wout_ref, out_ref, slab):
        f32 = jnp.float32
        relu = lambda v: jnp.maximum(v, 0.0)

        x = x_ref[...]        # (Bb, 6*L) f32, channel-major packed input
        wsm = wsm_ref[...]    # (16, C) f32: [wbr, wbuf, wlc, wt(4), wd(4), wc(4), pad]
        bias = bias_ref[...]  # (8, C)  f32: [bbr, bbuf, blc, bt, bd, bc, bfc, bout_pad]

        def put(off, v):      # static lane-aligned store into the fc-input slab
            slab[:, off:off + C] = v.astype(slab.dtype)

        # ---- scalar branches: Linear(1, C) as VPU broadcast outer product ----
        put(0 * C, relu(x[:, 1 * L - 1:1 * L] * wsm[0:1, :] + bias[0:1, :]))  # bitrate
        put(1 * C, relu(x[:, 2 * L - 1:2 * L] * wsm[1:2, :] + bias[1:2, :]))  # buffer
        put(2 * C, relu(x[:, 6 * L - 1:6 * L] * wsm[2:3, :] + bias[2:3, :]))  # left chunk

        # ---- Conv1d(1, C, 4): 4 shifted VPU multiply-adds per output position ----
        def conv_into(sig_base, w_row0, b_row, slab_base, t_out):
            for t in range(t_out):
                acc = x[:, sig_base + t:sig_base + t + 1] * wsm[w_row0:w_row0 + 1, :]
                for k in range(1, 4):
                    acc = acc + (x[:, sig_base + t + k:sig_base + t + k + 1]
                                 * wsm[w_row0 + k:w_row0 + k + 1, :])
                put(slab_base + t * C, relu(acc + bias[b_row:b_row + 1, :]))

        base = 3 * C
        conv_into(2 * L, 3, 3, base, t_sig)                    # throughput conv
        conv_into(3 * L, 7, 4, base + t_sig * C, t_sig)        # delay conv
        conv_into(4 * L, 11, 5, base + 2 * t_sig * C, t_c)     # chunk-size conv

        # ---- single big FC matmul (bf16 operands, f32 accumulation) ----
        fc = jnp.dot(slab[...], wfc_ref[...], preferred_element_type=f32)
        fc = relu(fc + bias[6:7, :])                           # (Bb, C) f32

        # ---- output layer + softmax (padded lanes get -1e30 bias -> exp == 0) ----
        logits = jnp.dot(fc.astype(wout_ref.dtype), wout_ref[...],
                         preferred_element_type=f32) + bias[7:8, :]
        m = jnp.max(logits, axis=-1, keepdims=True)
        e = jnp.exp(logits - m)
        out_ref[...] = e / jnp.sum(e, axis=-1, keepdims=True)

    return kernel


def init_params(key, state_dim, action_dim, n_conv=128, n_fc=128, n_fc1=128):
    s_len = state_dim[1]
    num_fc_input = (2 * n_conv * (s_len - 4 + 1) + 3 * n_fc
                    + n_conv * (action_dim - 4 + 1))
    ks = jax.random.split(key, 16)

    def w(k, shape, scale=0.1):
        return (scale * jax.random.normal(k, shape)).astype(jnp.float32)

    return dict(
        tConv_w=w(ks[0], (n_conv, 1, 4)), tConv_b=w(ks[1], (n_conv,)),
        dConv_w=w(ks[2], (n_conv, 1, 4)), dConv_b=w(ks[3], (n_conv,)),
        cConv_w=w(ks[4], (n_conv, 1, 4)), cConv_b=w(ks[5], (n_conv,)),
        buffer_w=w(ks[6], (n_fc, 1)), buffer_b=w(ks[7], (n_fc,)),
        left_w=w(ks[8], (n_fc, 1)), left_b=w(ks[9], (n_fc,)),
        bitrate_w=w(ks[10], (n_fc, 1)), bitrate_b=w(ks[11], (n_fc,)),
        fc_w=w(ks[12], (n_fc1, num_fc_input)), fc_b=w(ks[13], (n_fc1,)),
        out_w=w(ks[14], (action_dim, n_fc1)), out_b=w(ks[15], (action_dim,)),
    )


def actor_forward(params, inputs, state_dim, action_dim,
                  n_conv=128, n_fc=128, n_fc1=128):
    assert n_conv == n_fc == n_fc1 == 128, "packed-slab path assumes 128-wide layers"
    C = 128
    B = inputs.shape[0]
    L = state_dim[1]
    A = action_dim
    assert inputs.shape[1] == state_dim[0] == 6 and L >= 4 and 4 <= A <= min(L, C)
    t_sig = L - 3
    t_c = A - 3
    num_fc_input = (2 * t_sig + t_c + 3) * C

    f32, bf16 = jnp.float32, jnp.bfloat16

    # ---- pack inputs: (B, 6, L) -> (pb, 6*L), batch padded to sublane multiple ----
    x2d = inputs.astype(f32).reshape(B, 6 * L)
    if B <= 128:
        pb = max(8, ((B + 7) // 8) * 8)
        block_b = pb
    else:
        pb = ((B + 127) // 128) * 128
        block_b = 128
    if pb != B:
        x2d = jnp.pad(x2d, ((0, pb - B), (0, 0)))
    grid = (pb // block_b,)

    # ---- small weights / biases packed into two lane-dense slabs (glue) ----
    wsm = jnp.zeros((16, C), f32)
    wsm = wsm.at[0].set(params['bitrate_w'][:, 0])
    wsm = wsm.at[1].set(params['buffer_w'][:, 0])
    wsm = wsm.at[2].set(params['left_w'][:, 0])
    wsm = wsm.at[3:7].set(params['tConv_w'][:, 0, :].T)
    wsm = wsm.at[7:11].set(params['dConv_w'][:, 0, :].T)
    wsm = wsm.at[11:15].set(params['cConv_w'][:, 0, :].T)

    bout_pad = jnp.full((C,), -1e30, f32).at[:A].set(params['out_b'])
    bias = jnp.stack([params['bitrate_b'], params['buffer_b'], params['left_b'],
                      params['tConv_b'], params['dConv_b'], params['cConv_b'],
                      params['fc_b'], bout_pad], axis=0).astype(f32)

    # ---- permute the big FC weight to match the in-kernel slab layout (glue) ----
    # torch.cat order: [bitrate, buffer, t_flat, d_flat, c_flat, left]
    # torch conv flat index = channel * t_out + t ; slab index = t * C + channel
    W = params['fc_w']  # (n_fc1, num_fc_input)
    o = 0
    W_br = W[:, o:o + C]; o += C
    W_buf = W[:, o:o + C]; o += C
    W_t = W[:, o:o + C * t_sig]; o += C * t_sig
    W_d = W[:, o:o + C * t_sig]; o += C * t_sig
    W_c = W[:, o:o + C * t_c]; o += C * t_c
    W_lc = W[:, o:o + C]; o += C

    def perm_conv(Wseg, t_out):
        return jnp.transpose(Wseg.reshape(C, C, t_out), (2, 1, 0)).reshape(t_out * C, C)

    wfc = jnp.concatenate(
        [W_br.T, W_buf.T, W_lc.T,
         perm_conv(W_t, t_sig), perm_conv(W_d, t_sig), perm_conv(W_c, t_c)],
        axis=0).astype(bf16)                                  # (num_fc_input, C)

    wout = jnp.zeros((C, C), f32).at[:, :A].set(params['out_w'].T).astype(bf16)

    kernel = _make_actor_kernel(L, A, C)
    const = lambda i: (0, 0)
    bytes_accessed = int(wfc.size * 2 + wout.size * 2 + wsm.size * 4 + bias.size * 4
                         + pb * 6 * L * 4 + pb * C * 4)

    out = pl.pallas_call(
        kernel,
        out_shape=jax.ShapeDtypeStruct((pb, C), f32),
        grid_spec=pltpu.PrefetchScalarGridSpec(
            num_scalar_prefetch=0,
            grid=grid,
            in_specs=[
                pl.BlockSpec((block_b, 6 * L), lambda i: (i, 0)),   # packed inputs
                pl.BlockSpec((16, C), const),                        # small weights
                pl.BlockSpec((8, C), const),                         # biases
                pl.BlockSpec((num_fc_input, C), const),              # big FC weight (bf16)
                pl.BlockSpec((C, C), const),                         # output weight (bf16)
            ],
            out_specs=pl.BlockSpec((block_b, C), lambda i: (i, 0)),
            scratch_shapes=[pltpu.VMEM((block_b, num_fc_input), bf16)],
        ),
        compiler_params=pltpu.CompilerParams(
            dimension_semantics=("parallel",)),
        cost_estimate=pl.CostEstimate(
            flops=2 * pb * (num_fc_input * C + C * C),
            transcendentals=pb * C,
            bytes_accessed=bytes_accessed),
    )(x2d, wsm, bias, wfc, wout)
    return out[:B, :A]


def actor_reference(params, inputs, state_dim, action_dim):
    """Pure-JAX f32 reference mirroring the PyTorch forward exactly."""
    L = state_dim[1]
    A = action_dim
    x = inputs.astype(jnp.float32)
    relu = lambda v: jnp.maximum(v, 0.0)
    linear = lambda v, w, b: v @ w.T + b

    br = relu(linear(x[:, 0, L - 1:L], params['bitrate_w'], params['bitrate_b']))
    buf = relu(linear(x[:, 1, L - 1:L], params['buffer_w'], params['buffer_b']))
    lc = relu(linear(x[:, 5, L - 1:L], params['left_w'], params['left_b']))

    def conv1d(sig, w, b):
        t_out = sig.shape[1] - 3
        cols = [sig[:, t:t + 4] @ w[:, 0, :].T for t in range(t_out)]  # (B, O)
        out = jnp.stack(cols, axis=2) + b[None, :, None]               # (B, O, T)
        return relu(out)

    t_o = conv1d(x[:, 2, :], params['tConv_w'], params['tConv_b'])
    d_o = conv1d(x[:, 3, :], params['dConv_w'], params['dConv_b'])
    c_o = conv1d(x[:, 4, :A], params['cConv_w'], params['cConv_b'])
    B = x.shape[0]
    fc_in = jnp.concatenate(
        [br, buf, t_o.reshape(B, -1), d_o.reshape(B, -1), c_o.reshape(B, -1), lc],
        axis=1)
    fc = relu(fc_in @ params['fc_w'].T + params['fc_b'])
    logits = fc @ params['out_w'].T + params['out_b']
    return jax.nn.softmax(logits, axis=-1)


if __name__ == "__main__":
    B = 2
    state_dim = (6, 8)   # (S_INFO, S_LEN)
    action_dim = 6       # A_DIM

    key = jax.random.PRNGKey(0)
    pkey, xkey = jax.random.split(key)
    params = init_params(pkey, state_dim, action_dim)
    x = jax.random.normal(xkey, (B, state_dim[0], state_dim[1]), dtype=jnp.float32)

    out = actor_forward(params, x, state_dim, action_dim)
    out = jax.block_until_ready(out)

    ref = actor_reference(params, x, state_dim, action_dim)
    assert out.shape == (B, action_dim)
    # bf16 MXU operands vs f32 reference -> loosened tolerance (per review note).
    assert bool(jnp.allclose(out, ref, atol=1e-2, rtol=1e-2)), "mismatch vs reference"
    assert bool(jnp.allclose(jnp.sum(out, axis=-1), 1.0, atol=1e-4))
    print("KERNEL_OK")
</pallas_src>

<mosaic_0001>
module attributes {stable_mosaic.version = 11 : i64} {
  func.func @kernel(%arg0: i32, %arg1: memref<8x48xf32, #tpu.memory_space<vmem>>, %arg2: memref<16x128xf32, #tpu.memory_space<vmem>>, %arg3: memref<8x128xf32, #tpu.memory_space<vmem>>, %arg4: memref<2048x128xbf16, #tpu.memory_space<vmem>>, %arg5: memref<128x128xbf16, #tpu.memory_space<vmem>>, %arg6: memref<8x128xf32, #tpu.memory_space<vmem>>, %arg7: memref<8x2048xbf16, #tpu.memory_space<vmem>>) attributes {dimension_semantics = [#tpu.dimension_semantics<parallel>], iteration_bounds = array<i64: 1>, scalar_prefetch = 0 : i64, scratch_operands = 1 : i64, tpu.core_type = #tpu.core_type<tc>, window_params = [{transform_indices = @transform_0, window_bounds = array<i64: 8, 48>}, {pipeline_mode = #tpu.pipeline_mode<synchronous>, transform_indices = @transform_1, window_bounds = array<i64: 16, 128>}, {pipeline_mode = #tpu.pipeline_mode<synchronous>, transform_indices = @transform_2, window_bounds = array<i64: 8, 128>}, {pipeline_mode = #tpu.pipeline_mode<synchronous>, transform_indices = @transform_3, window_bounds = array<i64: 2048, 128>}, {pipeline_mode = #tpu.pipeline_mode<synchronous>, transform_indices = @transform_4, window_bounds = array<i64: 128, 128>}, {transform_indices = @transform_5, window_bounds = array<i64: 8, 128>}]} {
    %c0 = arith.constant 0 : index
    %c0_0 = arith.constant 0 : index
    %0 = vector.load %arg1[%c0, %c0_0] : memref<8x48xf32, #tpu.memory_space<vmem>>, vector<8x48xf32>
    %c0_1 = arith.constant 0 : index
    %c0_2 = arith.constant 0 : index
    %1 = vector.load %arg2[%c0_1, %c0_2] : memref<16x128xf32, #tpu.memory_space<vmem>>, vector<16x128xf32>
    %c0_3 = arith.constant 0 : index
    %c0_4 = arith.constant 0 : index
    %2 = vector.load %arg3[%c0_3, %c0_4] : memref<8x128xf32, #tpu.memory_space<vmem>>, vector<8x128xf32>
    %3 = vector.extract_strided_slice %0 {offsets = [0, 7], sizes = [8, 1], strides = [1, 1]} : vector<8x48xf32> to vector<8x1xf32>
    %4 = vector.extract_strided_slice %1 {offsets = [0, 0], sizes = [1, 128], strides = [1, 1]} : vector<16x128xf32> to vector<1x128xf32>
    %5 = vector.broadcast %3 : vector<8x1xf32> to vector<8x128xf32>
    %6 = vector.broadcast %4 : vector<1x128xf32> to vector<8x128xf32>
    %7 = arith.mulf %5, %6 : vector<8x128xf32>
    %8 = vector.extract_strided_slice %2 {offsets = [0, 0], sizes = [1, 128], strides = [1, 1]} : vector<8x128xf32> to vector<1x128xf32>
    %9 = vector.broadcast %8 : vector<1x128xf32> to vector<8x128xf32>
    %10 = arith.addf %7, %9 : vector<8x128xf32>
    %cst = arith.constant 0.000000e+00 : f32
    %11 = vector.broadcast %cst : f32 to vector<8x128xf32>
    %12 = arith.maximumf %10, %11 : vector<8x128xf32>
    %13 = arith.truncf %12 : vector<8x128xf32> to vector<8x128xbf16>
    %c0_5 = arith.constant 0 : index
    %c0_6 = arith.constant 0 : index
    %14 = vector.load %arg7[%c0_5, %c0_6] : memref<8x2048xbf16, #tpu.memory_space<vmem>>, vector<8x128xbf16>
    tpu.vector_store %arg7[%c0_5, %c0_6], %13 {strides = array<i32>} : memref<8x2048xbf16, #tpu.memory_space<vmem>>, vector<8x128xbf16>,
    %15 = vector.extract_strided_slice %0 {offsets = [0, 15], sizes = [8, 1], strides = [1, 1]} : vector<8x48xf32> to vector<8x1xf32>
    %16 = vector.extract_strided_slice %1 {offsets = [1, 0], sizes = [1, 128], strides = [1, 1]} : vector<16x128xf32> to vector<1x128xf32>
    %17 = vector.broadcast %15 : vector<8x1xf32> to vector<8x128xf32>
    %18 = vector.broadcast %16 : vector<1x128xf32> to vector<8x128xf32>
    %19 = arith.mulf %17, %18 : vector<8x128xf32>
    %20 = vector.extract_strided_slice %2 {offsets = [1, 0], sizes = [1, 128], strides = [1, 1]} : vector<8x128xf32> to vector<1x128xf32>
    %21 = vector.broadcast %20 : vector<1x128xf32> to vector<8x128xf32>
    %22 = arith.addf %19, %21 : vector<8x128xf32>
    %cst_7 = arith.constant 0.000000e+00 : f32
    %23 = vector.broadcast %cst_7 : f32 to vector<8x128xf32>
    %24 = arith.maximumf %22, %23 : vector<8x128xf32>
    %25 = arith.truncf %24 : vector<8x128xf32> to vector<8x128xbf16>
    %c0_8 = arith.constant 0 : index
    %c128 = arith.constant 128 : index
    %26 = vector.load %arg7[%c0_8, %c128] : memref<8x2048xbf16, #tpu.memory_space<vmem>>, vector<8x128xbf16>
    tpu.vector_store %arg7[%c0_8, %c128], %25 {strides = array<i32>} : memref<8x2048xbf16, #tpu.memory_space<vmem>>, vector<8x128xbf16>,
    %27 = vector.extract_strided_slice %0 {offsets = [0, 47], sizes = [8, 1], strides = [1, 1]} : vector<8x48xf32> to vector<8x1xf32>
    %28 = vector.extract_strided_slice %1 {offsets = [2, 0], sizes = [1, 128], strides = [1, 1]} : vector<16x128xf32> to vector<1x128xf32>
    %29 = vector.broadcast %27 : vector<8x1xf32> to vector<8x128xf32>
    %30 = vector.broadcast %28 : vector<1x128xf32> to vector<8x128xf32>
    %31 = arith.mulf %29, %30 : vector<8x128xf32>
    %32 = vector.extract_strided_slice %2 {offsets = [2, 0], sizes = [1, 128], strides = [1, 1]} : vector<8x128xf32> to vector<1x128xf32>
    %33 = vector.broadcast %32 : vector<1x128xf32> to vector<8x128xf32>
    %34 = arith.addf %31, %33 : vector<8x128xf32>
    %cst_9 = arith.constant 0.000000e+00 : f32
    %35 = vector.broadcast %cst_9 : f32 to vector<8x128xf32>
    %36 = arith.maximumf %34, %35 : vector<8x128xf32>
    %37 = arith.truncf %36 : vector<8x128xf32> to vector<8x128xbf16>
    %c0_10 = arith.constant 0 : index
    %c256 = arith.constant 256 : index
    %38 = vector.load %arg7[%c0_10, %c256] : memref<8x2048xbf16, #tpu.memory_space<vmem>>, vector<8x128xbf16>
    tpu.vector_store %arg7[%c0_10, %c256], %37 {strides = array<i32>} : memref<8x2048xbf16, #tpu.memory_space<vmem>>, vector<8x128xbf16>,
    %39 = vector.extract_strided_slice %0 {offsets = [0, 16], sizes = [8, 1], strides = [1, 1]} : vector<8x48xf32> to vector<8x1xf32>
    %40 = vector.extract_strided_slice %1 {offsets = [3, 0], sizes = [1, 128], strides = [1, 1]} : vector<16x128xf32> to vector<1x128xf32>
    %41 = vector.broadcast %39 : vector<8x1xf32> to vector<8x128xf32>
    %42 = vector.broadcast %40 : vector<1x128xf32> to vector<8x128xf32>
    %43 = arith.mulf %41, %42 : vector<8x128xf32>
    %44 = vector.extract_strided_slice %0 {offsets = [0, 17], sizes = [8, 1], strides = [1, 1]} : vector<8x48xf32> to vector<8x1xf32>
    %45 = vector.extract_strided_slice %1 {offsets = [4, 0], sizes = [1, 128], strides = [1, 1]} : vector<16x128xf32> to vector<1x128xf32>
    %46 = vector.broadcast %44 : vector<8x1xf32> to vector<8x128xf32>
    %47 = vector.broadcast %45 : vector<1x128xf32> to vector<8x128xf32>
    %48 = arith.mulf %46, %47 : vector<8x128xf32>
    %49 = arith.addf %43, %48 : vector<8x128xf32>
    %50 = vector.extract_strided_slice %0 {offsets = [0, 18], sizes = [8, 1], strides = [1, 1]} : vector<8x48xf32> to vector<8x1xf32>
    %51 = vector.extract_strided_slice %1 {offsets = [5, 0], sizes = [1, 128], strides = [1, 1]} : vector<16x128xf32> to vector<1x128xf32>
    %52 = vector.broadcast %50 : vector<8x1xf32> to vector<8x128xf32>
    %53 = vector.broadcast %51 : vector<1x128xf32> to vector<8x128xf32>
    %54 = arith.mulf %52, %53 : vector<8x128xf32>
    %55 = arith.addf %49, %54 : vector<8x128xf32>
    %56 = vector.extract_strided_slice %0 {offsets = [0, 19], sizes = [8, 1], strides = [1, 1]} : vector<8x48xf32> to vector<8x1xf32>
    %57 = vector.extract_strided_slice %1 {offsets = [6, 0], sizes = [1, 128], strides = [1, 1]} : vector<16x128xf32> to vector<1x128xf32>
    %58 = vector.broadcast %56 : vector<8x1xf32> to vector<8x128xf32>
    %59 = vector.broadcast %57 : vector<1x128xf32> to vector<8x128xf32>
    %60 = arith.mulf %58, %59 : vector<8x128xf32>
    %61 = arith.addf %55, %60 : vector<8x128xf32>
    %62 = vector.extract_strided_slice %2 {offsets = [3, 0], sizes = [1, 128], strides = [1, 1]} : vector<8x128xf32> to vector<1x128xf32>
    %63 = vector.broadcast %62 : vector<1x128xf32> to vector<8x128xf32>
    %64 = arith.addf %61, %63 : vector<8x128xf32>
    %cst_11 = arith.constant 0.000000e+00 : f32
    %65 = vector.broadcast %cst_11 : f32 to vector<8x128xf32>
    %66 = arith.maximumf %64, %65 : vector<8x128xf32>
    %67 = arith.truncf %66 : vector<8x128xf32> to vector<8x128xbf16>
    %c0_12 = arith.constant 0 : index
    %c384 = arith.constant 384 : index
    %68 = vector.load %arg7[%c0_12, %c384] : memref<8x2048xbf16, #tpu.memory_space<vmem>>, vector<8x128xbf16>
    tpu.vector_store %arg7[%c0_12, %c384], %67 {strides = array<i32>} : memref<8x2048xbf16, #tpu.memory_space<vmem>>, vector<8x128xbf16>,
    %69 = vector.extract_strided_slice %0 {offsets = [0, 17], sizes = [8, 1], strides = [1, 1]} : vector<8x48xf32> to vector<8x1xf32>
    %70 = vector.extract_strided_slice %1 {offsets = [3, 0], sizes = [1, 128], strides = [1, 1]} : vector<16x128xf32> to vector<1x128xf32>
    %71 = vector.broadcast %69 : vector<8x1xf32> to vector<8x128xf32>
    %72 = vector.broadcast %70 : vector<1x128xf32> to vector<8x128xf32>
    %73 = arith.mulf %71, %72 : vector<8x128xf32>
    %74 = vector.extract_strided_slice %0 {offsets = [0, 18], sizes = [8, 1], strides = [1, 1]} : vector<8x48xf32> to vector<8x1xf32>
    %75 = vector.extract_strided_slice %1 {offsets = [4, 0], sizes = [1, 128], strides = [1, 1]} : vector<16x128xf32> to vector<1x128xf32>
    %76 = vector.broadcast %74 : vector<8x1xf32> to vector<8x128xf32>
    %77 = vector.broadcast %75 : vector<1x128xf32> to vector<8x128xf32>
    %78 = arith.mulf %76, %77 : vector<8x128xf32>
    %79 = arith.addf %73, %78 : vector<8x128xf32>
    %80 = vector.extract_strided_slice %0 {offsets = [0, 19], sizes = [8, 1], strides = [1, 1]} : vector<8x48xf32> to vector<8x1xf32>
    %81 = vector.extract_strided_slice %1 {offsets = [5, 0], sizes = [1, 128], strides = [1, 1]} : vector<16x128xf32> to vector<1x128xf32>
    %82 = vector.broadcast %80 : vector<8x1xf32> to vector<8x128xf32>
    %83 = vector.broadcast %81 : vector<1x128xf32> to vector<8x128xf32>
    %84 = arith.mulf %82, %83 : vector<8x128xf32>
    %85 = arith.addf %79, %84 : vector<8x128xf32>
    %86 = vector.extract_strided_slice %0 {offsets = [0, 20], sizes = [8, 1], strides = [1, 1]} : vector<8x48xf32> to vector<8x1xf32>
    %87 = vector.extract_strided_slice %1 {offsets = [6, 0], sizes = [1, 128], strides = [1, 1]} : vector<16x128xf32> to vector<1x128xf32>
    %88 = vector.broadcast %86 : vector<8x1xf32> to vector<8x128xf32>
    %89 = vector.broadcast %87 : vector<1x128xf32> to vector<8x128xf32>
    %90 = arith.mulf %88, %89 : vector<8x128xf32>
    %91 = arith.addf %85, %90 : vector<8x128xf32>
    %92 = vector.extract_strided_slice %2 {offsets = [3, 0], sizes = [1, 128], strides = [1, 1]} : vector<8x128xf32> to vector<1x128xf32>
    %93 = vector.broadcast %92 : vector<1x128xf32> to vector<8x128xf32>
    %94 = arith.addf %91, %93 : vector<8x128xf32>
    %cst_13 = arith.constant 0.000000e+00 : f32
    %95 = vector.broadcast %cst_13 : f32 to vector<8x128xf32>
    %96 = arith.maximumf %94, %95 : vector<8x128xf32>
    %97 = arith.truncf %96 : vector<8x128xf32> to vector<8x128xbf16>
    %c0_14 = arith.constant 0 : index
    %c512 = arith.constant 512 : index
    %98 = vector.load %arg7[%c0_14, %c512] : memref<8x2048xbf16, #tpu.memory_space<vmem>>, vector<8x128xbf16>
    tpu.vector_store %arg7[%c0_14, %c512], %97 {strides = array<i32>} : memref<8x2048xbf16, #tpu.memory_space<vmem>>, vector<8x128xbf16>,
    %99 = vector.extract_strided_slice %0 {offsets = [0, 18], sizes = [8, 1], strides = [1, 1]} : vector<8x48xf32> to vector<8x1xf32>
    %100 = vector.extract_strided_slice %1 {offsets = [3, 0], sizes = [1, 128], strides = [1, 1]} : vector<16x128xf32> to vector<1x128xf32>
    %101 = vector.broadcast %99 : vector<8x1xf32> to vector<8x128xf32>
    %102 = vector.broadcast %100 : vector<1x128xf32> to vector<8x128xf32>
    %103 = arith.mulf %101, %102 : vector<8x128xf32>
    %104 = vector.extract_strided_slice %0 {offsets = [0, 19], sizes = [8, 1], strides = [1, 1]} : vector<8x48xf32> to vector<8x1xf32>
    %105 = vector.extract_strided_slice %1 {offsets = [4, 0], sizes = [1, 128], strides = [1, 1]} : vector<16x128xf32> to vector<1x128xf32>
    %106 = vector.broadcast %104 : vector<8x1xf32> to vector<8x128xf32>
    %107 = vector.broadcast %105 : vector<1x128xf32> to vector<8x128xf32>
    %108 = arith.mulf %106, %107 : vector<8x128xf32>
    %109 = arith.addf %103, %108 : vector<8x128xf32>
    %110 = vector.extract_strided_slice %0 {offsets = [0, 20], sizes = [8, 1], strides = [1, 1]} : vector<8x48xf32> to vector<8x1xf32>
    %111 = vector.extract_strided_slice %1 {offsets = [5, 0], sizes = [1, 128], strides = [1, 1]} : vector<16x128xf32> to vector<1x128xf32>
    %112 = vector.broadcast %110 : vector<8x1xf32> to vector<8x128xf32>
    %113 = vector.broadcast %111 : vector<1x128xf32> to vector<8x128xf32>
    %114 = arith.mulf %112, %113 : vector<8x128xf32>
    %115 = arith.addf %109, %114 : vector<8x128xf32>
    %116 = vector.extract_strided_slice %0 {offsets = [0, 21], sizes = [8, 1], strides = [1, 1]} : vector<8x48xf32> to vector<8x1xf32>
    %117 = vector.extract_strided_slice %1 {offsets = [6, 0], sizes = [1, 128], strides = [1, 1]} : vector<16x128xf32> to vector<1x128xf32>
    %118 = vector.broadcast %116 : vector<8x1xf32> to vector<8x128xf32>
    %119 = vector.broadcast %117 : vector<1x128xf32> to vector<8x128xf32>
    %120 = arith.mulf %118, %119 : vector<8x128xf32>
    %121 = arith.addf %115, %120 : vector<8x128xf32>
    %122 = vector.extract_strided_slice %2 {offsets = [3, 0], sizes = [1, 128], strides = [1, 1]} : vector<8x128xf32> to vector<1x128xf32>
    %123 = vector.broadcast %122 : vector<1x128xf32> to vector<8x128xf32>
    %124 = arith.addf %121, %123 : vector<8x128xf32>
    %cst_15 = arith.constant 0.000000e+00 : f32
    %125 = vector.broadcast %cst_15 : f32 to vector<8x128xf32>
    %126 = arith.maximumf %124, %125 : vector<8x128xf32>
    %127 = arith.truncf %126 : vector<8x128xf32> to vector<8x128xbf16>
    %c0_16 = arith.constant 0 : index
    %c640 = arith.constant 640 : index
    %128 = vector.load %arg7[%c0_16, %c640] : memref<8x2048xbf16, #tpu.memory_space<vmem>>, vector<8x128xbf16>
    tpu.vector_store %arg7[%c0_16, %c640], %127 {strides = array<i32>} : memref<8x2048xbf16, #tpu.memory_space<vmem>>, vector<8x128xbf16>,
    %129 = vector.extract_strided_slice %0 {offsets = [0, 19], sizes = [8, 1], strides = [1, 1]} : vector<8x48xf32> to vector<8x1xf32>
    %130 = vector.extract_strided_slice %1 {offsets = [3, 0], sizes = [1, 128], strides = [1, 1]} : vector<16x128xf32> to vector<1x128xf32>
    %131 = vector.broadcast %129 : vector<8x1xf32> to vector<8x128xf32>
    %132 = vector.broadcast %130 : vector<1x128xf32> to vector<8x128xf32>
    %133 = arith.mulf %131, %132 : vector<8x128xf32>
    %134 = vector.extract_strided_slice %0 {offsets = [0, 20], sizes = [8, 1], strides = [1, 1]} : vector<8x48xf32> to vector<8x1xf32>
    %135 = vector.extract_strided_slice %1 {offsets = [4, 0], sizes = [1, 128], strides = [1, 1]} : vector<16x128xf32> to vector<1x128xf32>
    %136 = vector.broadcast %134 : vector<8x1xf32> to vector<8x128xf32>
    %137 = vector.broadcast %135 : vector<1x128xf32> to vector<8x128xf32>
    %138 = arith.mulf %136, %137 : vector<8x128xf32>
    %139 = arith.addf %133, %138 : vector<8x128xf32>
    %140 = vector.extract_strided_slice %0 {offsets = [0, 21], sizes = [8, 1], strides = [1, 1]} : vector<8x48xf32> to vector<8x1xf32>
    %141 = vector.extract_strided_slice %1 {offsets = [5, 0], sizes = [1, 128], strides = [1, 1]} : vector<16x128xf32> to vector<1x128xf32>
    %142 = vector.broadcast %140 : vector<8x1xf32> to vector<8x128xf32>
    %143 = vector.broadcast %141 : vector<1x128xf32> to vector<8x128xf32>
    %144 = arith.mulf %142, %143 : vector<8x128xf32>
    %145 = arith.addf %139, %144 : vector<8x128xf32>
    %146 = vector.extract_strided_slice %0 {offsets = [0, 22], sizes = [8, 1], strides = [1, 1]} : vector<8x48xf32> to vector<8x1xf32>
    %147 = vector.extract_strided_slice %1 {offsets = [6, 0], sizes = [1, 128], strides = [1, 1]} : vector<16x128xf32> to vector<1x128xf32>
    %148 = vector.broadcast %146 : vector<8x1xf32> to vector<8x128xf32>
    %149 = vector.broadcast %147 : vector<1x128xf32> to vector<8x128xf32>
    %150 = arith.mulf %148, %149 : vector<8x128xf32>
    %151 = arith.addf %145, %150 : vector<8x128xf32>
    %152 = vector.extract_strided_slice %2 {offsets = [3, 0], sizes = [1, 128], strides = [1, 1]} : vector<8x128xf32> to vector<1x128xf32>
    %153 = vector.broadcast %152 : vector<1x128xf32> to vector<8x128xf32>
    %154 = arith.addf %151, %153 : vector<8x128xf32>
    %cst_17 = arith.constant 0.000000e+00 : f32
    %155 = vector.broadcast %cst_17 : f32 to vector<8x128xf32>
    %156 = arith.maximumf %154, %155 : vector<8x128xf32>
    %157 = arith.truncf %156 : vector<8x128xf32> to vector<8x128xbf16>
    %c0_18 = arith.constant 0 : index
    %c768 = arith.constant 768 : index
    %158 = vector.load %arg7[%c0_18, %c768] : memref<8x2048xbf16, #tpu.memory_space<vmem>>, vector<8x128xbf16>
    tpu.vector_store %arg7[%c0_18, %c768], %157 {strides = array<i32>} : memref<8x2048xbf16, #tpu.memory_space<vmem>>, vector<8x128xbf16>,
    %159 = vector.extract_strided_slice %0 {offsets = [0, 20], sizes = [8, 1], strides = [1, 1]} : vector<8x48xf32> to vector<8x1xf32>
    %160 = vector.extract_strided_slice %1 {offsets = [3, 0], sizes = [1, 128], strides = [1, 1]} : vector<16x128xf32> to vector<1x128xf32>
    %161 = vector.broadcast %159 : vector<8x1xf32> to vector<8x128xf32>
    %162 = vector.broadcast %160 : vector<1x128xf32> to vector<8x128xf32>
    %163 = arith.mulf %161, %162 : vector<8x128xf32>
    %164 = vector.extract_strided_slice %0 {offsets = [0, 21], sizes = [8, 1], strides = [1, 1]} : vector<8x48xf32> to vector<8x1xf32>
    %165 = vector.extract_strided_slice %1 {offsets = [4, 0], sizes = [1, 128], strides = [1, 1]} : vector<16x128xf32> to vector<1x128xf32>
    %166 = vector.broadcast %164 : vector<8x1xf32> to vector<8x128xf32>
    %167 = vector.broadcast %165 : vector<1x128xf32> to vector<8x128xf32>
    %168 = arith.mulf %166, %167 : vector<8x128xf32>
    %169 = arith.addf %163, %168 : vector<8x128xf32>
    %170 = vector.extract_strided_slice %0 {offsets = [0, 22], sizes = [8, 1], strides = [1, 1]} : vector<8x48xf32> to vector<8x1xf32>
    %171 = vector.extract_strided_slice %1 {offsets = [5, 0], sizes = [1, 128], strides = [1, 1]} : vector<16x128xf32> to vector<1x128xf32>
    %172 = vector.broadcast %170 : vector<8x1xf32> to vector<8x128xf32>
    %173 = vector.broadcast %171 : vector<1x128xf32> to vector<8x128xf32>
    %174 = arith.mulf %172, %173 : vector<8x128xf32>
    %175 = arith.addf %169, %174 : vector<8x128xf32>
    %176 = vector.extract_strided_slice %0 {offsets = [0, 23], sizes = [8, 1], strides = [1, 1]} : vector<8x48xf32> to vector<8x1xf32>
    %177 = vector.extract_strided_slice %1 {offsets = [6, 0], sizes = [1, 128], strides = [1, 1]} : vector<16x128xf32> to vector<1x128xf32>
    %178 = vector.broadcast %176 : vector<8x1xf32> to vector<8x128xf32>
    %179 = vector.broadcast %177 : vector<1x128xf32> to vector<8x128xf32>
    %180 = arith.mulf %178, %179 : vector<8x128xf32>
    %181 = arith.addf %175, %180 : vector<8x128xf32>
    %182 = vector.extract_strided_slice %2 {offsets = [3, 0], sizes = [1, 128], strides = [1, 1]} : vector<8x128xf32> to vector<1x128xf32>
    %183 = vector.broadcast %182 : vector<1x128xf32> to vector<8x128xf32>
    %184 = arith.addf %181, %183 : vector<8x128xf32>
    %cst_19 = arith.constant 0.000000e+00 : f32
    %185 = vector.broadcast %cst_19 : f32 to vector<8x128xf32>
    %186 = arith.maximumf %184, %185 : vector<8x128xf32>
    %187 = arith.truncf %186 : vector<8x128xf32> to vector<8x128xbf16>
    %c0_20 = arith.constant 0 : index
    %c896 = arith.constant 896 : index
    %188 = vector.load %arg7[%c0_20, %c896] : memref<8x2048xbf16, #tpu.memory_space<vmem>>, vector<8x128xbf16>
    tpu.vector_store %arg7[%c0_20, %c896], %187 {strides = array<i32>} : memref<8x2048xbf16, #tpu.memory_space<vmem>>, vector<8x128xbf16>,
    %189 = vector.extract_strided_slice %0 {offsets = [0, 24], sizes = [8, 1], strides = [1, 1]} : vector<8x48xf32> to vector<8x1xf32>
    %190 = vector.extract_strided_slice %1 {offsets = [7, 0], sizes = [1, 128], strides = [1, 1]} : vector<16x128xf32> to vector<1x128xf32>
    %191 = vector.broadcast %189 : vector<8x1xf32> to vector<8x128xf32>
    %192 = vector.broadcast %190 : vector<1x128xf32> to vector<8x128xf32>
    %193 = arith.mulf %191, %192 : vector<8x128xf32>
    %194 = vector.extract_strided_slice %0 {offsets = [0, 25], sizes = [8, 1], strides = [1, 1]} : vector<8x48xf32> to vector<8x1xf32>
    %195 = vector.extract_strided_slice %1 {offsets = [8, 0], sizes = [1, 128], strides = [1, 1]} : vector<16x128xf32> to vector<1x128xf32>
    %196 = vector.broadcast %194 : vector<8x1xf32> to vector<8x128xf32>
    %197 = vector.broadcast %195 : vector<1x128xf32> to vector<8x128xf32>
    %198 = arith.mulf %196, %197 : vector<8x128xf32>
    %199 = arith.addf %193, %198 : vector<8x128xf32>
    %200 = vector.extract_strided_slice %0 {offsets = [0, 26], sizes = [8, 1], strides = [1, 1]} : vector<8x48xf32> to vector<8x1xf32>
    %201 = vector.extract_strided_slice %1 {offsets = [9, 0], sizes = [1, 128], strides = [1, 1]} : vector<16x128xf32> to vector<1x128xf32>
    %202 = vector.broadcast %200 : vector<8x1xf32> to vector<8x128xf32>
    %203 = vector.broadcast %201 : vector<1x128xf32> to vector<8x128xf32>
    %204 = arith.mulf %202, %203 : vector<8x128xf32>
    %205 = arith.addf %199, %204 : vector<8x128xf32>
    %206 = vector.extract_strided_slice %0 {offsets = [0, 27], sizes = [8, 1], strides = [1, 1]} : vector<8x48xf32> to vector<8x1xf32>
    %207 = vector.extract_strided_slice %1 {offsets = [10, 0], sizes = [1, 128], strides = [1, 1]} : vector<16x128xf32> to vector<1x128xf32>
    %208 = vector.broadcast %206 : vector<8x1xf32> to vector<8x128xf32>
    %209 = vector.broadcast %207 : vector<1x128xf32> to vector<8x128xf32>
    %210 = arith.mulf %208, %209 : vector<8x128xf32>
    %211 = arith.addf %205, %210 : vector<8x128xf32>
    %212 = vector.extract_strided_slice %2 {offsets = [4, 0], sizes = [1, 128], strides = [1, 1]} : vector<8x128xf32> to vector<1x128xf32>
    %213 = vector.broadcast %212 : vector<1x128xf32> to vector<8x128xf32>
    %214 = arith.addf %211, %213 : vector<8x128xf32>
    %cst_21 = arith.constant 0.000000e+00 : f32
    %215 = vector.broadcast %cst_21 : f32 to vector<8x128xf32>
    %216 = arith.maximumf %214, %215 : vector<8x128xf32>
    %217 = arith.truncf %216 : vector<8x128xf32> to vector<8x128xbf16>
    %c0_22 = arith.constant 0 : index
    %c1024 = arith.constant 1024 : index
    %218 = vector.load %arg7[%c0_22, %c1024] : memref<8x2048xbf16, #tpu.memory_space<vmem>>, vector<8x128xbf16>
    tpu.vector_store %arg7[%c0_22, %c1024], %217 {strides = array<i32>} : memref<8x2048xbf16, #tpu.memory_space<vmem>>, vector<8x128xbf16>,
    %219 = vector.extract_strided_slice %0 {offsets = [0, 25], sizes = [8, 1], strides = [1, 1]} : vector<8x48xf32> to vector<8x1xf32>
    %220 = vector.extract_strided_slice %1 {offsets = [7, 0], sizes = [1, 128], strides = [1, 1]} : vector<16x128xf32> to vector<1x128xf32>
    %221 = vector.broadcast %219 : vector<8x1xf32> to vector<8x128xf32>
    %222 = vector.broadcast %220 : vector<1x128xf32> to vector<8x128xf32>
    %223 = arith.mulf %221, %222 : vector<8x128xf32>
    %224 = vector.extract_strided_slice %0 {offsets = [0, 26], sizes = [8, 1], strides = [1, 1]} : vector<8x48xf32> to vector<8x1xf32>
    %225 = vector.extract_strided_slice %1 {offsets = [8, 0], sizes = [1, 128], strides = [1, 1]} : vector<16x128xf32> to vector<1x128xf32>
    %226 = vector.broadcast %224 : vector<8x1xf32> to vector<8x128xf32>
    %227 = vector.broadcast %225 : vector<1x128xf32> to vector<8x128xf32>
    %228 = arith.mulf %226, %227 : vector<8x128xf32>
    %229 = arith.addf %223, %228 : vector<8x128xf32>
    %230 = vector.extract_strided_slice %0 {offsets = [0, 27], sizes = [8, 1], strides = [1, 1]} : vector<8x48xf32> to vector<8x1xf32>
    %231 = vector.extract_strided_slice %1 {offsets = [9, 0], sizes = [1, 128], strides = [1, 1]} : vector<16x128xf32> to vector<1x128xf32>
    %232 = vector.broadcast %230 : vector<8x1xf32> to vector<8x128xf32>
    %233 = vector.broadcast %231 : vector<1x128xf32> to vector<8x128xf32>
    %234 = arith.mulf %232, %233 : vector<8x128xf32>
    %235 = arith.addf %229, %234 : vector<8x128xf32>
    %236 = vector.extract_strided_slice %0 {offsets = [0, 28], sizes = [8, 1], strides = [1, 1]} : vector<8x48xf32> to vector<8x1xf32>
    %237 = vector.extract_strided_slice %1 {offsets = [10, 0], sizes = [1, 128], strides = [1, 1]} : vector<16x128xf32> to vector<1x128xf32>
    %238 = vector.broadcast %236 : vector<8x1xf32> to vector<8x128xf32>
    %239 = vector.broadcast %237 : vector<1x128xf32> to vector<8x128xf32>
    %240 = arith.mulf %238, %239 : vector<8x128xf32>
    %241 = arith.addf %235, %240 : vector<8x128xf32>
    %242 = vector.extract_strided_slice %2 {offsets = [4, 0], sizes = [1, 128], strides = [1, 1]} : vector<8x128xf32> to vector<1x128xf32>
    %243 = vector.broadcast %242 : vector<1x128xf32> to vector<8x128xf32>
    %244 = arith.addf %241, %243 : vector<8x128xf32>
    %cst_23 = arith.constant 0.000000e+00 : f32
    %245 = vector.broadcast %cst_23 : f32 to vector<8x128xf32>
    %246 = arith.maximumf %244, %245 : vector<8x128xf32>
    %247 = arith.truncf %246 : vector<8x128xf32> to vector<8x128xbf16>
    %c0_24 = arith.constant 0 : index
    %c1152 = arith.constant 1152 : index
    %248 = vector.load %arg7[%c0_24, %c1152] : memref<8x2048xbf16, #tpu.memory_space<vmem>>, vector<8x128xbf16>
    tpu.vector_store %arg7[%c0_24, %c1152], %247 {strides = array<i32>} : memref<8x2048xbf16, #tpu.memory_space<vmem>>, vector<8x128xbf16>,
    %249 = vector.extract_strided_slice %0 {offsets = [0, 26], sizes = [8, 1], strides = [1, 1]} : vector<8x48xf32> to vector<8x1xf32>
    %250 = vector.extract_strided_slice %1 {offsets = [7, 0], sizes = [1, 128], strides = [1, 1]} : vector<16x128xf32> to vector<1x128xf32>
    %251 = vector.broadcast %249 : vector<8x1xf32> to vector<8x128xf32>
    %252 = vector.broadcast %250 : vector<1x128xf32> to vector<8x128xf32>
    %253 = arith.mulf %251, %252 : vector<8x128xf32>
    %254 = vector.extract_strided_slice %0 {offsets = [0, 27], sizes = [8, 1], strides = [1, 1]} : vector<8x48xf32> to vector<8x1xf32>
    %255 = vector.extract_strided_slice %1 {offsets = [8, 0], sizes = [1, 128], strides = [1, 1]} : vector<16x128xf32> to vector<1x128xf32>
    %256 = vector.broadcast %254 : vector<8x1xf32> to vector<8x128xf32>
    %257 = vector.broadcast %255 : vector<1x128xf32> to vector<8x128xf32>
    %258 = arith.mulf %256, %257 : vector<8x128xf32>
    %259 = arith.addf %253, %258 : vector<8x128xf32>
    %260 = vector.extract_strided_slice %0 {offsets = [0, 28], sizes = [8, 1], strides = [1, 1]} : vector<8x48xf32> to vector<8x1xf32>
    %261 = vector.extract_strided_slice %1 {offsets = [9, 0], sizes = [1, 128], strides = [1, 1]} : vector<16x128xf32> to vector<1x128xf32>
    %262 = vector.broadcast %260 : vector<8x1xf32> to vector<8x128xf32>
    %263 = vector.broadcast %261 : vector<1x128xf32> to vector<8x128xf32>
    %264 = arith.mulf %262, %263 : vector<8x128xf32>
    %265 = arith.addf %259, %264 : vector<8x128xf32>
    %266 = vector.extract_strided_slice %0 {offsets = [0, 29], sizes = [8, 1], strides = [1, 1]} : vector<8x48xf32> to vector<8x1xf32>
    %267 = vector.extract_strided_slice %1 {offsets = [10, 0], sizes = [1, 128], strides = [1, 1]} : vector<16x128xf32> to vector<1x128xf32>
    %268 = vector.broadcast %266 : vector<8x1xf32> to vector<8x128xf32>
    %269 = vector.broadcast %267 : vector<1x128xf32> to vector<8x128xf32>
    %270 = arith.mulf %268, %269 : vector<8x128xf32>
    %271 = arith.addf %265, %270 : vector<8x128xf32>
    %272 = vector.extract_strided_slice %2 {offsets = [4, 0], sizes = [1, 128], strides = [1, 1]} : vector<8x128xf32> to vector<1x128xf32>
    %273 = vector.broadcast %272 : vector<1x128xf32> to vector<8x128xf32>
    %274 = arith.addf %271, %273 : vector<8x128xf32>
    %cst_25 = arith.constant 0.000000e+00 : f32
    %275 = vector.broadcast %cst_25 : f32 to vector<8x128xf32>
    %276 = arith.maximumf %274, %275 : vector<8x128xf32>
    %277 = arith.truncf %276 : vector<8x128xf32> to vector<8x128xbf16>
    %c0_26 = arith.constant 0 : index
    %c1280 = arith.constant 1280 : index
    %278 = vector.load %arg7[%c0_26, %c1280] : memref<8x2048xbf16, #tpu.memory_space<vmem>>, vector<8x128xbf16>
    tpu.vector_store %arg7[%c0_26, %c1280], %277 {strides = array<i32>} : memref<8x2048xbf16, #tpu.memory_space<vmem>>, vector<8x128xbf16>,
    %279 = vector.extract_strided_slice %0 {offsets = [0, 27], sizes = [8, 1], strides = [1, 1]} : vector<8x48xf32> to vector<8x1xf32>
    %280 = vector.extract_strided_slice %1 {offsets = [7, 0], sizes = [1, 128], strides = [1, 1]} : vector<16x128xf32> to vector<1x128xf32>
    %281 = vector.broadcast %279 : vector<8x1xf32> to vector<8x128xf32>
    %282 = vector.broadcast %280 : vector<1x128xf32> to vector<8x128xf32>
    %283 = arith.mulf %281, %282 : vector<8x128xf32>
    %284 = vector.extract_strided_slice %0 {offsets = [0, 28], sizes = [8, 1], strides = [1, 1]} : vector<8x48xf32> to vector<8x1xf32>
    %285 = vector.extract_strided_slice %1 {offsets = [8, 0], sizes = [1, 128], strides = [1, 1]} : vector<16x128xf32> to vector<1x128xf32>
    %286 = vector.broadcast %284 : vector<8x1xf32> to vector<8x128xf32>
    %287 = vector.broadcast %285 : vector<1x128xf32> to vector<8x128xf32>
    %288 = arith.mulf %286, %287 : vector<8x128xf32>
    %289 = arith.addf %283, %288 : vector<8x128xf32>
    %290 = vector.extract_strided_slice %0 {offsets = [0, 29], sizes = [8, 1], strides = [1, 1]} : vector<8x48xf32> to vector<8x1xf32>
    %291 = vector.extract_strided_slice %1 {offsets = [9, 0], sizes = [1, 128], strides = [1, 1]} : vector<16x128xf32> to vector<1x128xf32>
    %292 = vector.broadcast %290 : vector<8x1xf32> to vector<8x128xf32>
    %293 = vector.broadcast %291 : vector<1x128xf32> to vector<8x128xf32>
    %294 = arith.mulf %292, %293 : vector<8x128xf32>
    %295 = arith.addf %289, %294 : vector<8x128xf32>
    %296 = vector.extract_strided_slice %0 {offsets = [0, 30], sizes = [8, 1], strides = [1, 1]} : vector<8x48xf32> to vector<8x1xf32>
    %297 = vector.extract_strided_slice %1 {offsets = [10, 0], sizes = [1, 128], strides = [1, 1]} : vector<16x128xf32> to vector<1x128xf32>
    %298 = vector.broadcast %296 : vector<8x1xf32> to vector<8x128xf32>
    %299 = vector.broadcast %297 : vector<1x128xf32> to vector<8x128xf32>
    %300 = arith.mulf %298, %299 : vector<8x128xf32>
    %301 = arith.addf %295, %300 : vector<8x128xf32>
    %302 = vector.extract_strided_slice %2 {offsets = [4, 0], sizes = [1, 128], strides = [1, 1]} : vector<8x128xf32> to vector<1x128xf32>
    %303 = vector.broadcast %302 : vector<1x128xf32> to vector<8x128xf32>
    %304 = arith.addf %301, %303 : vector<8x128xf32>
    %cst_27 = arith.constant 0.000000e+00 : f32
    %305 = vector.broadcast %cst_27 : f32 to vector<8x128xf32>
    %306 = arith.maximumf %304, %305 : vector<8x128xf32>
    %307 = arith.truncf %306 : vector<8x128xf32> to vector<8x128xbf16>
    %c0_28 = arith.constant 0 : index
    %c1408 = arith.constant 1408 : index
    %308 = vector.load %arg7[%c0_28, %c1408] : memref<8x2048xbf16, #tpu.memory_space<vmem>>, vector<8x128xbf16>
    tpu.vector_store %arg7[%c0_28, %c1408], %307 {strides = array<i32>} : memref<8x2048xbf16, #tpu.memory_space<vmem>>, vector<8x128xbf16>,
    %309 = vector.extract_strided_slice %0 {offsets = [0, 28], sizes = [8, 1], strides = [1, 1]} : vector<8x48xf32> to vector<8x1xf32>
    %310 = vector.extract_strided_slice %1 {offsets = [7, 0], sizes = [1, 128], strides = [1, 1]} : vector<16x128xf32> to vector<1x128xf32>
    %311 = vector.broadcast %309 : vector<8x1xf32> to vector<8x128xf32>
    %312 = vector.broadcast %310 : vector<1x128xf32> to vector<8x128xf32>
    %313 = arith.mulf %311, %312 : vector<8x128xf32>
    %314 = vector.extract_strided_slice %0 {offsets = [0, 29], sizes = [8, 1], strides = [1, 1]} : vector<8x48xf32> to vector<8x1xf32>
    %315 = vector.extract_strided_slice %1 {offsets = [8, 0], sizes = [1, 128], strides = [1, 1]} : vector<16x128xf32> to vector<1x128xf32>
    %316 = vector.broadcast %314 : vector<8x1xf32> to vector<8x128xf32>
    %317 = vector.broadcast %315 : vector<1x128xf32> to vector<8x128xf32>
    %318 = arith.mulf %316, %317 : vector<8x128xf32>
    %319 = arith.addf %313, %318 : vector<8x128xf32>
    %320 = vector.extract_strided_slice %0 {offsets = [0, 30], sizes = [8, 1], strides = [1, 1]} : vector<8x48xf32> to vector<8x1xf32>
    %321 = vector.extract_strided_slice %1 {offsets = [9, 0], sizes = [1, 128], strides = [1, 1]} : vector<16x128xf32> to vector<1x128xf32>
    %322 = vector.broadcast %320 : vector<8x1xf32> to vector<8x128xf32>
    %323 = vector.broadcast %321 : vector<1x128xf32> to vector<8x128xf32>
    %324 = arith.mulf %322, %323 : vector<8x128xf32>
    %325 = arith.addf %319, %324 : vector<8x128xf32>
    %326 = vector.extract_strided_slice %0 {offsets = [0, 31], sizes = [8, 1], strides = [1, 1]} : vector<8x48xf32> to vector<8x1xf32>
    %327 = vector.extract_strided_slice %1 {offsets = [10, 0], sizes = [1, 128], strides = [1, 1]} : vector<16x128xf32> to vector<1x128xf32>
    %328 = vector.broadcast %326 : vector<8x1xf32> to vector<8x128xf32>
    %329 = vector.broadcast %327 : vector<1x128xf32> to vector<8x128xf32>
    %330 = arith.mulf %328, %329 : vector<8x128xf32>
    %331 = arith.addf %325, %330 : vector<8x128xf32>
    %332 = vector.extract_strided_slice %2 {offsets = [4, 0], sizes = [1, 128], strides = [1, 1]} : vector<8x128xf32> to vector<1x128xf32>
    %333 = vector.broadcast %332 : vector<1x128xf32> to vector<8x128xf32>
    %334 = arith.addf %331, %333 : vector<8x128xf32>
    %cst_29 = arith.constant 0.000000e+00 : f32
    %335 = vector.broadcast %cst_29 : f32 to vector<8x128xf32>
    %336 = arith.maximumf %334, %335 : vector<8x128xf32>
    %337 = arith.truncf %336 : vector<8x128xf32> to vector<8x128xbf16>
    %c0_30 = arith.constant 0 : index
    %c1536 = arith.constant 1536 : index
    %338 = vector.load %arg7[%c0_30, %c1536] : memref<8x2048xbf16, #tpu.memory_space<vmem>>, vector<8x128xbf16>
    tpu.vector_store %arg7[%c0_30, %c1536], %337 {strides = array<i32>} : memref<8x2048xbf16, #tpu.memory_space<vmem>>, vector<8x128xbf16>,
    %339 = vector.extract_strided_slice %0 {offsets = [0, 32], sizes = [8, 1], strides = [1, 1]} : vector<8x48xf32> to vector<8x1xf32>
    %340 = vector.extract_strided_slice %1 {offsets = [11, 0], sizes = [1, 128], strides = [1, 1]} : vector<16x128xf32> to vector<1x128xf32>
    %341 = vector.broadcast %339 : vector<8x1xf32> to vector<8x128xf32>
    %342 = vector.broadcast %340 : vector<1x128xf32> to vector<8x128xf32>
    %343 = arith.mulf %341, %342 : vector<8x128xf32>
    %344 = vector.extract_strided_slice %0 {offsets = [0, 33], sizes = [8, 1], strides = [1, 1]} : vector<8x48xf32> to vector<8x1xf32>
    %345 = vector.extract_strided_slice %1 {offsets = [12, 0], sizes = [1, 128], strides = [1, 1]} : vector<16x128xf32> to vector<1x128xf32>
    %346 = vector.broadcast %344 : vector<8x1xf32> to vector<8x128xf32>
    %347 = vector.broadcast %345 : vector<1x128xf32> to vector<8x128xf32>
    %348 = arith.mulf %346, %347 : vector<8x128xf32>
    %349 = arith.addf %343, %348 : vector<8x128xf32>
    %350 = vector.extract_strided_slice %0 {offsets = [0, 34], sizes = [8, 1], strides = [1, 1]} : vector<8x48xf32> to vector<8x1xf32>
    %351 = vector.extract_strided_slice %1 {offsets = [13, 0], sizes = [1, 128], strides = [1, 1]} : vector<16x128xf32> to vector<1x128xf32>
    %352 = vector.broadcast %350 : vector<8x1xf32> to vector<8x128xf32>
    %353 = vector.broadcast %351 : vector<1x128xf32> to vector<8x128xf32>
    %354 = arith.mulf %352, %353 : vector<8x128xf32>
    %355 = arith.addf %349, %354 : vector<8x128xf32>
    %356 = vector.extract_strided_slice %0 {offsets = [0, 35], sizes = [8, 1], strides = [1, 1]} : vector<8x48xf32> to vector<8x1xf32>
    %357 = vector.extract_strided_slice %1 {offsets = [14, 0], sizes = [1, 128], strides = [1, 1]} : vector<16x128xf32> to vector<1x128xf32>
    %358 = vector.broadcast %356 : vector<8x1xf32> to vector<8x128xf32>
    %359 = vector.broadcast %357 : vector<1x128xf32> to vector<8x128xf32>
    %360 = arith.mulf %358, %359 : vector<8x128xf32>
    %361 = arith.addf %355, %360 : vector<8x128xf32>
    %362 = vector.extract_strided_slice %2 {offsets = [5, 0], sizes = [1, 128], strides = [1, 1]} : vector<8x128xf32> to vector<1x128xf32>
    %363 = vector.broadcast %362 : vector<1x128xf32> to vector<8x128xf32>
    %364 = arith.addf %361, %363 : vector<8x128xf32>
    %cst_31 = arith.constant 0.000000e+00 : f32
    %365 = vector.broadcast %cst_31 : f32 to vector<8x128xf32>
    %366 = arith.maximumf %364, %365 : vector<8x128xf32>
    %367 = arith.truncf %366 : vector<8x128xf32> to vector<8x128xbf16>
    %c0_32 = arith.constant 0 : index
    %c1664 = arith.constant 1664 : index
    %368 = vector.load %arg7[%c0_32, %c1664] : memref<8x2048xbf16, #tpu.memory_space<vmem>>, vector<8x128xbf16>
    tpu.vector_store %arg7[%c0_32, %c1664], %367 {strides = array<i32>} : memref<8x2048xbf16, #tpu.memory_space<vmem>>, vector<8x128xbf16>,
    %369 = vector.extract_strided_slice %0 {offsets = [0, 33], sizes = [8, 1], strides = [1, 1]} : vector<8x48xf32> to vector<8x1xf32>
    %370 = vector.extract_strided_slice %1 {offsets = [11, 0], sizes = [1, 128], strides = [1, 1]} : vector<16x128xf32> to vector<1x128xf32>
    %371 = vector.broadcast %369 : vector<8x1xf32> to vector<8x128xf32>
    %372 = vector.broadcast %370 : vector<1x128xf32> to vector<8x128xf32>
    %373 = arith.mulf %371, %372 : vector<8x128xf32>
    %374 = vector.extract_strided_slice %0 {offsets = [0, 34], sizes = [8, 1], strides = [1, 1]} : vector<8x48xf32> to vector<8x1xf32>
    %375 = vector.extract_strided_slice %1 {offsets = [12, 0], sizes = [1, 128], strides = [1, 1]} : vector<16x128xf32> to vector<1x128xf32>
    %376 = vector.broadcast %374 : vector<8x1xf32> to vector<8x128xf32>
    %377 = vector.broadcast %375 : vector<1x128xf32> to vector<8x128xf32>
    %378 = arith.mulf %376, %377 : vector<8x128xf32>
    %379 = arith.addf %373, %378 : vector<8x128xf32>
    %380 = vector.extract_strided_slice %0 {offsets = [0, 35], sizes = [8, 1], strides = [1, 1]} : vector<8x48xf32> to vector<8x1xf32>
    %381 = vector.extract_strided_slice %1 {offsets = [13, 0], sizes = [1, 128], strides = [1, 1]} : vector<16x128xf32> to vector<1x128xf32>
    %382 = vector.broadcast %380 : vector<8x1xf32> to vector<8x128xf32>
    %383 = vector.broadcast %381 : vector<1x128xf32> to vector<8x128xf32>
    %384 = arith.mulf %382, %383 : vector<8x128xf32>
    %385 = arith.addf %379, %384 : vector<8x128xf32>
    %386 = vector.extract_strided_slice %0 {offsets = [0, 36], sizes = [8, 1], strides = [1, 1]} : vector<8x48xf32> to vector<8x1xf32>
    %387 = vector.extract_strided_slice %1 {offsets = [14, 0], sizes = [1, 128], strides = [1, 1]} : vector<16x128xf32> to vector<1x128xf32>
    %388 = vector.broadcast %386 : vector<8x1xf32> to vector<8x128xf32>
    %389 = vector.broadcast %387 : vector<1x128xf32> to vector<8x128xf32>
    %390 = arith.mulf %388, %389 : vector<8x128xf32>
    %391 = arith.addf %385, %390 : vector<8x128xf32>
    %392 = vector.extract_strided_slice %2 {offsets = [5, 0], sizes = [1, 128], strides = [1, 1]} : vector<8x128xf32> to vector<1x128xf32>
    %393 = vector.broadcast %392 : vector<1x128xf32> to vector<8x128xf32>
    %394 = arith.addf %391, %393 : vector<8x128xf32>
    %cst_33 = arith.constant 0.000000e+00 : f32
    %395 = vector.broadcast %cst_33 : f32 to vector<8x128xf32>
    %396 = arith.maximumf %394, %395 : vector<8x128xf32>
    %397 = arith.truncf %396 : vector<8x128xf32> to vector<8x128xbf16>
    %c0_34 = arith.constant 0 : index
    %c1792 = arith.constant 1792 : index
    %398 = vector.load %arg7[%c0_34, %c1792] : memref<8x2048xbf16, #tpu.memory_space<vmem>>, vector<8x128xbf16>
    tpu.vector_store %arg7[%c0_34, %c1792], %397 {strides = array<i32>} : memref<8x2048xbf16, #tpu.memory_space<vmem>>, vector<8x128xbf16>,
    %399 = vector.extract_strided_slice %0 {offsets = [0, 34], sizes = [8, 1], strides = [1, 1]} : vector<8x48xf32> to vector<8x1xf32>
    %400 = vector.extract_strided_slice %1 {offsets = [11, 0], sizes = [1, 128], strides = [1, 1]} : vector<16x128xf32> to vector<1x128xf32>
    %401 = vector.broadcast %399 : vector<8x1xf32> to vector<8x128xf32>
    %402 = vector.broadcast %400 : vector<1x128xf32> to vector<8x128xf32>
    %403 = arith.mulf %401, %402 : vector<8x128xf32>
    %404 = vector.extract_strided_slice %0 {offsets = [0, 35], sizes = [8, 1], strides = [1, 1]} : vector<8x48xf32> to vector<8x1xf32>
    %405 = vector.extract_strided_slice %1 {offsets = [12, 0], sizes = [1, 128], strides = [1, 1]} : vector<16x128xf32> to vector<1x128xf32>
    %406 = vector.broadcast %404 : vector<8x1xf32> to vector<8x128xf32>
    %407 = vector.broadcast %405 : vector<1x128xf32> to vector<8x128xf32>
    %408 = arith.mulf %406, %407 : vector<8x128xf32>
    %409 = arith.addf %403, %408 : vector<8x128xf32>
    %410 = vector.extract_strided_slice %0 {offsets = [0, 36], sizes = [8, 1], strides = [1, 1]} : vector<8x48xf32> to vector<8x1xf32>
    %411 = vector.extract_strided_slice %1 {offsets = [13, 0], sizes = [1, 128], strides = [1, 1]} : vector<16x128xf32> to vector<1x128xf32>
    %412 = vector.broadcast %410 : vector<8x1xf32> to vector<8x128xf32>
    %413 = vector.broadcast %411 : vector<1x128xf32> to vector<8x128xf32>
    %414 = arith.mulf %412, %413 : vector<8x128xf32>
    %415 = arith.addf %409, %414 : vector<8x128xf32>
    %416 = vector.extract_strided_slice %0 {offsets = [0, 37], sizes = [8, 1], strides = [1, 1]} : vector<8x48xf32> to vector<8x1xf32>
    %417 = vector.extract_strided_slice %1 {offsets = [14, 0], sizes = [1, 128], strides = [1, 1]} : vector<16x128xf32> to vector<1x128xf32>
    %418 = vector.broadcast %416 : vector<8x1xf32> to vector<8x128xf32>
    %419 = vector.broadcast %417 : vector<1x128xf32> to vector<8x128xf32>
    %420 = arith.mulf %418, %419 : vector<8x128xf32>
    %421 = arith.addf %415, %420 : vector<8x128xf32>
    %422 = vector.extract_strided_slice %2 {offsets = [5, 0], sizes = [1, 128], strides = [1, 1]} : vector<8x128xf32> to vector<1x128xf32>
    %423 = vector.broadcast %422 : vector<1x128xf32> to vector<8x128xf32>
    %424 = arith.addf %421, %423 : vector<8x128xf32>
    %cst_35 = arith.constant 0.000000e+00 : f32
    %425 = vector.broadcast %cst_35 : f32 to vector<8x128xf32>
    %426 = arith.maximumf %424, %425 : vector<8x128xf32>
    %427 = arith.truncf %426 : vector<8x128xf32> to vector<8x128xbf16>
    %c0_36 = arith.constant 0 : index
    %c1920 = arith.constant 1920 : index
    %428 = vector.load %arg7[%c0_36, %c1920] : memref<8x2048xbf16, #tpu.memory_space<vmem>>, vector<8x128xbf16>
    tpu.vector_store %arg7[%c0_36, %c1920], %427 {strides = array<i32>} : memref<8x2048xbf16, #tpu.memory_space<vmem>>, vector<8x128xbf16>,
    %c0_37 = arith.constant 0 : index
    %c0_38 = arith.constant 0 : index
    %429 = vector.load %arg7[%c0_37, %c0_38] : memref<8x2048xbf16, #tpu.memory_space<vmem>>, vector<8x2048xbf16>
    %c0_39 = arith.constant 0 : index
    %c0_40 = arith.constant 0 : index
    %430 = vector.load %arg4[%c0_39, %c0_40] : memref<2048x128xbf16, #tpu.memory_space<vmem>>, vector<2048x128xbf16>
    %cst_41 = arith.constant dense<0.000000e+00> : vector<8x128xf32>
    %431 = tpu.matmul %429, %430, %cst_41 {dimension_numbers = #tpu.dot_dimension_numbers<[1], [0], [0], [1], [0, 0, 1, 1], [], []>} : vector<8x2048xbf16>, vector<2048x128xbf16>, vector<8x128xf32> -> vector<8x128xf32>
    %432 = vector.extract_strided_slice %2 {offsets = [6, 0], sizes = [1, 128], strides = [1, 1]} : vector<8x128xf32> to vector<1x128xf32>
    %433 = vector.broadcast %432 : vector<1x128xf32> to vector<8x128xf32>
    %434 = arith.addf %431, %433 : vector<8x128xf32>
    %cst_42 = arith.constant 0.000000e+00 : f32
    %435 = vector.broadcast %cst_42 : f32 to vector<8x128xf32>
    %436 = arith.maximumf %434, %435 : vector<8x128xf32>
    %437 = arith.truncf %436 : vector<8x128xf32> to vector<8x128xbf16>
    %c0_43 = arith.constant 0 : index
    %c0_44 = arith.constant 0 : index
    %438 = vector.load %arg5[%c0_43, %c0_44] : memref<128x128xbf16, #tpu.memory_space<vmem>>, vector<128x128xbf16>
    %cst_45 = arith.constant dense<0.000000e+00> : vector<8x128xf32>
    %439 = tpu.matmul %437, %438, %cst_45 {dimension_numbers = #tpu.dot_dimension_numbers<[1], [0], [0], [1], [0, 0, 1, 1], [], []>} : vector<8x128xbf16>, vector<128x128xbf16>, vector<8x128xf32> -> vector<8x128xf32>
    %440 = vector.extract_strided_slice %2 {offsets = [7, 0], sizes = [1, 128], strides = [1, 1]} : vector<8x128xf32> to vector<1x128xf32>
    %441 = vector.broadcast %440 : vector<1x128xf32> to vector<8x128xf32>
    %442 = arith.addf %439, %441 : vector<8x128xf32>
    %cst_46 = arith.constant dense<0xFF800000> : vector<8xf32>
    %443 = vector.multi_reduction <maximumf>, %442, %cst_46 [1] : vector<8x128xf32> to vector<8xf32>
    %444 = vector.shape_cast %443 : vector<8xf32> to vector<8x1xf32>
    %445 = vector.broadcast %444 : vector<8x1xf32> to vector<8x128xf32>
    %446 = arith.subf %442, %445 : vector<8x128xf32>
    %447 = math.exp %446 : vector<8x128xf32>
    %cst_47 = arith.constant dense<0.000000e+00> : vector<8xf32>
    %448 = vector.multi_reduction <add>, %447, %cst_47 [1] : vector<8x128xf32> to vector<8xf32>
    %449 = vector.shape_cast %448 : vector<8xf32> to vector<8x1xf32>
    %450 = vector.broadcast %449 : vector<8x1xf32> to vector<8x128xf32>
    %451 = arith.divf %447, %450 : vector<8x128xf32>
    %c0_48 = arith.constant 0 : index
    %c0_49 = arith.constant 0 : index
    %452 = vector.load %arg6[%c0_48, %c0_49] : memref<8x128xf32, #tpu.memory_space<vmem>>, vector<8x128xf32>
    tpu.vector_store %arg6[%c0_48, %c0_49], %451 {strides = array<i32>} : memref<8x128xf32, #tpu.memory_space<vmem>>, vector<8x128xf32>,
    return
  }
  func.func @transform_0(%arg0: i32) -> (i32, i32) {
    %c0_i32 = arith.constant 0 : i32
    %c0_i32_0 = arith.constant 0 : i32
    return %arg0, %c0_i32 : i32, i32
  }
  func.func @transform_1(%arg0: i32) -> (i32, i32) {
    %c0_i32 = arith.constant 0 : i32
    %c0_i32_0 = arith.constant 0 : i32
    %c0_i32_1 = arith.constant 0 : i32
    return %c0_i32, %c0_i32_0 : i32, i32
  }
  func.func @transform_2(%arg0: i32) -> (i32, i32) {
    %c0_i32 = arith.constant 0 : i32
    %c0_i32_0 = arith.constant 0 : i32
    %c0_i32_1 = arith.constant 0 : i32
    return %c0_i32, %c0_i32_0 : i32, i32
  }
  func.func @transform_3(%arg0: i32) -> (i32, i32) {
    %c0_i32 = arith.constant 0 : i32
    %c0_i32_0 = arith.constant 0 : i32
    %c0_i32_1 = arith.constant 0 : i32
    return %c0_i32, %c0_i32_0 : i32, i32
  }
  func.func @transform_4(%arg0: i32) -> (i32, i32) {
    %c0_i32 = arith.constant 0 : i32
    %c0_i32_0 = arith.constant 0 : i32
    %c0_i32_1 = arith.constant 0 : i32
    return %c0_i32, %c0_i32_0 : i32, i32
  }
  func.func @transform_5(%arg0: i32) -> (i32, i32) {
    %c0_i32 = arith.constant 0 : i32
    %c0_i32_0 = arith.constant 0 : i32
    return %arg0, %c0_i32 : i32, i32
  }
}

</mosaic_0001>

<bundles_post_ra>
// kernel: tpu_custom_call.1
= control target key start
LH: loop header
LB: loop body
LE: loop exit
PB: predicated region body
PF: predicated region fallthrough
CT: control target
= control target key end

     0   :  { %10 = vsyncpa [#allocation4], 0  ;;  %s3065_s0 = inlined_call_operand.hbm [shape: f32[8,48], index: 0, kind: input, shape index: {}]   ;;  %s3066_s1 = inlined_call_operand.hbm [shape: f32[16,128], index: 1, kind: input, shape index: {}]   ;;  %s3067_s2 = inlined_call_operand.hbm [shape: f32[8,128], index: 2, kind: input, shape index: {}]   ;;  %s3068_s3 = inlined_call_operand.hbm [shape: bf16[2048,128], index: 3, kind: input, shape index: {}]   ;;  %s3069_s4 = inlined_call_operand.hbm [shape: bf16[128,128], index: 4, kind: input, shape index: {}]   ;;  %s3070_s5 = inlined_call_operand.hbm [shape: f32[8,128], index: 5, kind: output, shape index: {}]  }
   0x1   :  { %11 = vsyncpa [#allocation7], 0 }
   0x2   :  { %12 = vsyncpa [#allocation10], 0 }
   0x3   :  { %13 = vsyncpa [#allocation5], 0  ;;  %s2699_s18 = smov [#allocation6]   ;;  %s2559_s22 = scalar_lea.hbm %s3066_s1, 256 }
   0x4   :  { %s29_s19 = sshll.u32 %s2699_s18, 4  ;;  %p2560_p0 = scmp.ne.s32.totalorder %s3066_s1, %s2559_s22  ;;  %s30_s19 = int_to_ptr.vmem [resolvable:$true] %s29_s19 }
   0x5   :  { %p2563_p1 = scmp.lt.u32.totalorder %s2559_s22, %s3066_s1 }
   0x7   :  { %p2565_p2 = pnand %p2563_p1, %p2560_p0 }
   0x9   :  { %2568 = shalt.err (!%p2565_p2)
}
   0xa   :  { %s2569_s27 = scalar_lea.vmem %s30_s19, 256  ;;  %p2574_p4 = scmp.lt.s32.totalorder %s30_s19, %s30_s19 }
   0xb   :  { %p2570_p3 = scmp.ne.s32.totalorder %s30_s19, %s2569_s27  ;;  %p2575_p5 = scmp.lt.s32.totalorder %s2569_s27, %s2569_s27 }
   0xd   :  { %p2576_p6 = por %p2575_p5, %p2574_p4 }
   0xf   :  { %p2577_p7 = pnand %p2576_p6, %p2570_p3 }
  0x11   :  { %2580 = shalt.err (!%p2577_p7)
}
  0x12   :  { %s2700_s28 = smov 128   ;;  %s2701_s29 = smov 8  }
  0x13   :  { %35 = dma.hbm_to_vmem [thread:$0]  %s3066_s1, 256, %s30_s19, [#allocation7], %s2700_s28, %s2700_s28, %s2701_s29  }
  0x14   :  { %s2702_s7 = smov [#allocation9]   ;;  %s2581_s11 = scalar_lea.hbm %s3068_s3, 16384 }
  0x15   :  { %s51_s8 = sshll.u32 %s2702_s7, 4  ;;  %p2582_p8 = scmp.ne.s32.totalorder %s3068_s3, %s2581_s11  ;;  %s52_s8 = int_to_ptr.vmem [resolvable:$true] %s51_s8 }
  0x16   :  { %p2585_p9 = scmp.lt.u32.totalorder %s2581_s11, %s3068_s3 }
  0x18   :  { %p2587_p10 = pnand %p2585_p9, %p2582_p8 }
  0x1a   :  { %2590 = shalt.err (!%p2587_p10)
}
  0x1b   :  { %s2591_s16 = scalar_lea.vmem %s52_s8, 16384  ;;  %p2596_p12 = scmp.lt.s32.totalorder %s52_s8, %s52_s8 }
  0x1c   :  { %p2592_p11 = scmp.ne.s32.totalorder %s52_s8, %s2591_s16  ;;  %p2597_p13 = scmp.lt.s32.totalorder %s2591_s16, %s2591_s16 }
  0x1e   :  { %p2598_p0 = por %p2597_p13, %p2596_p12 }
  0x20   :  { %p2599_p1 = pnand %p2598_p0, %p2592_p11 }
  0x22   :  { %2602 = shalt.err (!%p2599_p1)
}
  0x23   :  { %s2703_s1 = smov 64   ;;  %s2704_s17 = smov 4  }
  0x24   :  { %57 = dma.hbm_to_vmem [thread:$0]  %s3068_s3, 16384, %s52_s8, [#allocation10], %s2703_s1, %s2703_s1, %s2704_s17  }
  0x25   :  { %s2705_s20 = smov [#allocation3]   ;;  %s2706_s22 = smov [#allocation8]  }
  0x26   :  { %s20_s21 = sshll.u32 %s2705_s20, 4  ;;  %s42_s23 = sshll.u32 %s2706_s22, 4  ;;  %s21_s21 = int_to_ptr.vmem [resolvable:$true] %s20_s21  ;;  %s43_s23 = int_to_ptr.vmem [resolvable:$true] %s42_s23 }
  0x27   :  { %s2603_s26 = scalar_lea.hbm %s3065_s0, 128 }
  0x28   :  { %p2604_p2 = scmp.ne.s32.totalorder %s3065_s0, %s2603_s26  ;;  %p2607_p3 = scmp.lt.u32.totalorder %s2603_s26, %s3065_s0 }
  0x2a   :  { %p2609_p4 = pnand %p2607_p3, %p2604_p2 }
  0x2c   :  { %2612 = shalt.err (!%p2609_p4)
}
  0x2d   :  { %s2613_s3 = scalar_lea.vmem %s21_s21, 128  ;;  %p2618_p6 = scmp.lt.s32.totalorder %s21_s21, %s21_s21 }
  0x2e   :  { %p2614_p5 = scmp.ne.s32.totalorder %s21_s21, %s2613_s3  ;;  %p2619_p7 = scmp.lt.s32.totalorder %s2613_s3, %s2613_s3 }
  0x30   :  { %p2620_p8 = por %p2619_p7, %p2618_p6 }
  0x32   :  { %p2621_p9 = pnand %p2620_p8, %p2614_p5 }
  0x34   :  { %2624 = shalt.err (!%p2621_p9)
}
  0x35   :  { %23 = dma.hbm_to_vmem [thread:$0]  %s3065_s0, 128, %s21_s21, [#allocation4]  }
  0x36   :  { %s2625_s10 = scalar_lea.hbm %s3067_s2, 128 }
  0x37   :  { %p2626_p10 = scmp.ne.s32.totalorder %s3067_s2, %s2625_s10  ;;  %p2629_p11 = scmp.lt.u32.totalorder %s2625_s10, %s3067_s2 }
  0x39   :  { %p2631_p12 = pnand %p2629_p11, %p2626_p10 }
  0x3b   :  { %2634 = shalt.err (!%p2631_p12)
}
  0x3c   :  { %s2635_s15 = scalar_lea.vmem %s43_s23, 128  ;;  %p2640_p0 = scmp.lt.s32.totalorder %s43_s23, %s43_s23 }
  0x3d   :  { %p2636_p13 = scmp.ne.s32.totalorder %s43_s23, %s2635_s15  ;;  %p2641_p1 = scmp.lt.s32.totalorder %s2635_s15, %s2635_s15 }
  0x3f   :  { %p2642_p2 = por %p2641_p1, %p2640_p0 }
  0x41   :  { %p2643_p3 = pnand %p2642_p2, %p2636_p13 }
  0x43   :  { %2646 = shalt.err (!%p2643_p3)
}
  0x44   :  { %45 = dma.hbm_to_vmem [thread:$0]  %s3067_s2, 128, %s43_s23, [#allocation7]  }
  0x45   :  { %s2707_s18 = smov [#allocation11]   ;;  %s2647_s22 = scalar_lea.hbm %s3069_s4, 1024 }
  0x46   :  { %s63_s19 = sshll.u32 %s2707_s18, 4  ;;  %p2648_p4 = scmp.ne.s32.totalorder %s3069_s4, %s2647_s22  ;;  %s64_s19 = int_to_ptr.vmem [resolvable:$true] %s63_s19 }
  0x47   :  { %p2651_p5 = scmp.lt.u32.totalorder %s2647_s22, %s3069_s4 }
  0x49   :  { %p2653_p6 = pnand %p2651_p5, %p2648_p4 }
  0x4b   :  { %2656 = shalt.err (!%p2653_p6)
}
  0x4c   :  { %s2657_s28 = scalar_lea.vmem %s64_s19, 1024  ;;  %p2662_p8 = scmp.lt.s32.totalorder %s64_s19, %s64_s19 }
  0x4d   :  { %p2658_p7 = scmp.ne.s32.totalorder %s64_s19, %s2657_s28  ;;  %p2663_p9 = scmp.lt.s32.totalorder %s2657_s28, %s2657_s28 }
  0x4f   :  { %p2664_p10 = por %p2663_p9, %p2662_p8 }
  0x51   :  { %p2665_p11 = pnand %p2664_p10, %p2658_p7 }
  0x53   :  { %2668 = shalt.err (!%p2665_p11)
}
  0x54   :  { %69 = dma.hbm_to_vmem [thread:$0]  %s3069_s4, 1024, %s64_s19, [#allocation10], %s2703_s1, %s2703_s1, %s2704_s17  }
  0x55   :  { %2691 = dma.done.wait [#allocation4], 128  }
  0x56   :  { %2692 = vsyncadd [#allocation4], 4294967168 }
  0x57   :  { %2693 = dma.done.wait [#allocation7], 384  }
  0x58   :  { %2694 = vsyncadd [#allocation7], 4294966912 }
  0x59   :  { %2695 = dma.done.wait [#allocation10], 17408  }
  0x5a   :  { %2696 = vsyncadd [#allocation10], 4294949888  ;;  %v2708_v0 = vmov 18   ;;  %v2709_v1 = vmov 16   ;;  %v2832_v2 = vld [vmem:[#allocation3] sm:$0xff]  ;;  %v2404_v5 = vld [vmem:[#allocation9 + $0x48] sm:$0xff]   ;;  %v95_v60 = vlaneseq }
  0x5b   :  { %2378 = vset.pattern.permute.xlu1 %v2708_v0  ;;  %2376 = vset.pattern.permute.xlu0 %v2709_v1  ;;  %v2402_v3 = vld [vmem:[#allocation9 + $0x40] sm:$0xff]   ;;  %v2405_v6 = vld [vmem:[#allocation9 + $0x8] sm:$0xff]   ;;  %v2710_v7 = vmov 7   ;;  %v2711_v8 = vmov 17   ;;  %v2408_v11 = vld [vmem:[#allocation9 + $0x50] sm:$0xff]   ;;  %v2712_v13 = vmov 15  }
  0x5c   :  { %162 = vperm.xlu1 %2378, %v2832_v2   ;;  %143 = vperm.xlu0 %2376, %v2832_v2   ;;  %v2403_v4 = vld [vmem:[#allocation9] sm:$0xff]   ;;  %v2409_v12 = vld [vmem:[#allocation9 + $0x10] sm:$0xff]   ;;  %v2713_v14 = vmov 19   ;;  %v2410_v15 = vld [vmem:[#allocation9 + $0xc8] sm:$0xff]   ;;  %v2714_v20 = vmov 47   ;;  %v2715_v21 = vmov 21  }
  0x5d   :  { %2134 = vmatprep.subr.bf16.mxu0 %v2402_v3  ;;  %v2406_v9 = vld [vmem:[#allocation9 + $0xc0] sm:$0xff]   ;;  %v2411_v16 = vld [vmem:[#allocation9 + $0x88] sm:$0xff]   ;;  %v2412_v17 = vld [vmem:[#allocation9 + $0x58] sm:$0xff]   ;;  %v2716_v27 = vmov 20   ;;  %v2717_v28 = vmov 24   ;;  %v2718_v34 = vmov 22  }
  0x5e   :  { %2135 = vmatpush3.bf16.msra.mxu0 %v2403_v4  ;;  %v2407_v10 = vld [vmem:[#allocation9 + $0x80] sm:$0xff]   ;;  %2156 = vmatprep.subr.bf16.mxu1 %v2406_v9  ;;  %v2413_v18 = vld [vmem:[#allocation9 + $0x18] sm:$0xff]   ;;  %v2414_v19 = vld [vmem:[#allocation9 + $0xd0] sm:$0xff]   ;;  %v2719_v35 = vmov 27   ;;  %v2720_v40 = vmov 23   ;;  %v2721_v41 = vmov 30  }
  0x5f   :  { %2136 = vmatprep.subr.bf16.mxu0 %v2404_v5  ;;  %2157 = vmatpush3.bf16.msra.mxu1 %v2407_v10  ;;  %v2415_v22 = vld [vmem:[#allocation9 + $0x90] sm:$0xff]   ;;  %v2416_v23 = vld [vmem:[#allocation9 + $0x60] sm:$0xff]   ;;  %v2418_v25 = vld [vmem:[#allocation9 + $0xd8] sm:$0xff]   ;;  %v2722_v47 = vmov 25   ;;  %v2723_v48 = vmov 34   ;;  %v2724_v51 = vmov 26  }
  0x60   :  { %2379 = vset.pattern.permute.xlu1 %v2710_v7  ;;  %2377 = vset.pattern.permute.xlu0 %v2711_v8  ;;  %v2417_v24 = vld [vmem:[#allocation9 + $0x20] sm:$0xff]   ;;  %v2419_v26 = vld [vmem:[#allocation9 + $0x98] sm:$0xff]   ;;  %v2420_v29 = vld [vmem:[#allocation9 + $0x68] sm:$0xff]   ;;  %v2725_v52 = vmov 36   ;;  %v2726_v53 = vmov 28   ;;  %v2727_v54 = vmov 37  }
  0x61   :  { %92 = vperm.xlu1 %2379, %v2832_v2   ;;  %152 = vperm.xlu0 %2377, %v2832_v2   ;;  %v2421_v30 = vld [vmem:[#allocation9 + $0x28] sm:$0xff]   ;;  %v2422_v31 = vld [vmem:[#allocation9 + $0xe0] sm:$0xff]   ;;  %v2424_v33 = vld [vmem:[#allocation9 + $0x70] sm:$0xff]   ;;  %v2728_v55 = vmov 29   ;;  %v2729_v56 = vmov 32   ;;  %v2730_v57 = vmov 33  }
  0x62   :  { %2137 = vmatpush3.bf16.msra.mxu0 %v2405_v6  ;;  %2158 = vmatprep.subr.bf16.mxu1 %v2410_v15  ;;  %v2423_v32 = vld [vmem:[#allocation9 + $0xa0] sm:$0xff]   ;;  %v2426_v36 = vld [vmem:[#allocation9 + $0xe8] sm:$0xff]   ;;  %v2425_v37 = vld [vmem:[#allocation9 + $0x30] sm:$0xff]   ;;  %v2731_v58 = vmov 35   ;;  %v2732_v59 = vmov 31   ;;  %v2859_v61 = vshrl.u32 %v95_v60, 7 }
  0x63   :  { %2138 = vmatprep.subr.bf16.mxu0 %v2408_v11  ;;  %2159 = vmatpush3.bf16.msra.mxu1 %v2411_v16  ;;  %v2427_v38 = vld [vmem:[#allocation9 + $0xa8] sm:$0xff]   ;;  %v2428_v39 = vld [vmem:[#allocation9 + $0x78] sm:$0xff]   ;;  %v2430_v42 = vld [vmem:[#allocation9 + $0xf0] sm:$0xff]   ;;  %vm2734_vm0 = vmmov 0   ;;  %s2735_s4 = smov [#allocation12]  }
  0x64   :  { %2160 = vmatprep.subr.bf16.mxu1 %v2414_v19  ;;  %v2429_v43 = vld [vmem:[#allocation9 + $0x38] sm:$0xff]   ;;  %v2431_v44 = vld [vmem:[#allocation9 + $0xb0] sm:$0xff]   ;;  %v2434_v45 = vld [vmem:[#allocation9 + $0x140] sm:$0xff]   ;;  %v2862_v62 = vsub.s32 0, %v2859_v61  ;;  %v2867_v0 = vsub.s32 3, %v2859_v61  ;;  %v2870_v1 = vsub.s32 4, %v2859_v61 }
  0x65   :  { %2380 = vset.pattern.permute.xlu1 %v2712_v13  ;;  %2381 = vset.pattern.permute.xlu0 %v2713_v14  ;;  %v2435_v46 = vld [vmem:[#allocation9 + $0xf8] sm:$0xff]   ;;  %v2442_v50 = vld [vmem:[#allocation9 + $0x1c0] sm:$0xff]   ;;  %v2864_v63 = vld [vmem:[#allocation6] sm:$0xff]  ;;  %v2873_v3 = vsub.s32 5, %v2859_v61  ;;  %v2881_v7 = vsub.s32 6, %v2859_v61  ;;  %s1971_s1 = sshll.u32 %s2735_s4, 4  ;;  %s1972_s1 = int_to_ptr.vmem [resolvable:$true] %s1971_s1 }
  0x66   :  { %109 = vperm.xlu1 %2380, %v2832_v2   ;;  %172 = vperm.xlu0 %2381, %v2832_v2   ;;  %v2437_v49 = vld [vmem:[#allocation9 + $0xb8] sm:$0xff]   ;;  %v98_v8 = vrot.slane %v2864_v63, %v2862_v62  ;;  %v149_v9 = vrot.slane %v2864_v63, %v2867_v0  ;;  %v158_v10 = vrot.slane %v2864_v63, %v2870_v1  ;;  %s2669_s17 = scalar_lea.vmem %s1972_s1, 128  ;;  %p2674_p13 = scmp.lt.s32.totalorder %s1972_s1, %s1972_s1 }
  0x67   :  { %2139 = vmatpush3.bf16.msra.mxu0 %v2409_v12  ;;  %2161 = vmatpush3.bf16.msra.mxu1 %v2415_v22  ;;  %v2878_v6 = vld [vmem:[#allocation8] sm:$0xff]  ;;  %v2891_v11 = vrot.slane %v2864_v63, %v2873_v3  ;;  %v2899_v19 = vrot.slane %v2864_v63, %v2881_v7  ;;  %p2670_p12 = scmp.ne.s32.totalorder %s1972_s1, %s2669_s17  ;;  %p2675_p0 = scmp.lt.s32.totalorder %s2669_s17, %s2669_s17 }
  0x68   :  { %2140 = vmatprep.subr.bf16.mxu0 %v2412_v17  ;;  %2162 = vmatprep.subr.bf16.mxu1 %v2418_v25  ;;  %v103_v12 = vrot.slane %v2878_v6, %v2862_v62 }
  0x69   :  { %p2676_p1 = por %p2675_p0, %p2674_p13 }
  0x6a   :  { %2382 = vset.pattern.permute.xlu1 %v2714_v20  ;;  %2384 = vset.pattern.permute.xlu0 %v2715_v21 }
  0x6b   :  { %126 = vperm.xlu1 %2382, %v2832_v2   ;;  %210 = vperm.xlu0 %2384, %v2832_v2   ;;  %p2677_p2 = pnand %p2676_p1, %p2670_p12 }
  0x6c   :  { %2141 = vmatpush3.bf16.msra.mxu0 %v2413_v18  ;;  %2163 = vmatpush3.bf16.msra.mxu1 %v2419_v26 }
  0x6d   :  { %2142 = vmatprep.subr.bf16.mxu0 %v2416_v23  ;;  %2164 = vmatprep.subr.bf16.mxu1 %v2422_v31  ;;  %v2903_v23 = vsub.s32 2, %v2859_v61 }
  0x6f   :  { %2383 = vset.pattern.permute.xlu1 %v2716_v27  ;;  %2387 = vset.pattern.permute.xlu0 %v2717_v28 }
  0x70   :  { %195 = vperm.xlu1 %2383, %v2832_v2   ;;  %250 = vperm.xlu0 %2387, %v2832_v2  }
  0x71   :  { %2143 = vmatpush3.bf16.msra.mxu0 %v2417_v24  ;;  %2165 = vmatpush3.bf16.msra.mxu1 %v2423_v32 }
  0x72   :  { %2144 = vmatprep.subr.bf16.mxu0 %v2420_v29  ;;  %2166 = vmatprep.subr.bf16.mxu1 %v2426_v36 }
  0x74   :  { %2385 = vset.pattern.permute.xlu1 %v2718_v34  ;;  %2390 = vset.pattern.permute.xlu0 %v2719_v35 }
  0x75   :  { %225 = vperm.xlu1 %2385, %v2832_v2   ;;  %279 = vperm.xlu0 %2390, %v2832_v2  }
  0x76   :  { %2145 = vmatpush3.bf16.msra.mxu0 %v2421_v30  ;;  %2167 = vmatpush3.bf16.msra.mxu1 %v2427_v38  ;;  %v2909_v30 = vrot.slane %v2878_v6, %v2867_v0  ;;  %v137_v38 = vrot.slane %v2878_v6, %v2903_v23 }
  0x77   :  { %2146 = vmatprep.subr.bf16.mxu0 %v2424_v33  ;;  %2168 = vmatprep.subr.bf16.mxu1 %v2430_v42  ;;  %v132_v33 = vrot.slane %v2864_v63, %v2903_v23 }
  0x79   :  { %2386 = vset.pattern.permute.xlu1 %v2720_v40  ;;  %2393 = vset.pattern.permute.xlu0 %v2721_v41 }
  0x7a   :  { %240 = vperm.xlu1 %2386, %v2832_v2   ;;  %332 = vperm.xlu0 %2393, %v2832_v2  }
  0x7b   :  { %2147 = vmatpush3.bf16.msra.mxu0 %v2425_v37  ;;  %2169 = vmatpush3.bf16.msra.mxu1 %v2431_v44 }
  0x7c   :  { %2148 = vmatprep.subr.bf16.mxu0 %v2428_v39  ;;  %2170 = vmatprep.subr.bf16.mxu1 %v2435_v46 }
  0x7e   :  { %2388 = vset.pattern.permute.xlu1 %v2722_v47  ;;  %2396 = vset.pattern.permute.xlu0 %v2723_v48 }
  0x7f   :  { %259 = vperm.xlu1 %2388, %v2832_v2   ;;  %376 = vperm.xlu0 %2396, %v2832_v2  }
  0x80   :  { %2149 = vmatpush3.bf16.msra.mxu0 %v2429_v43  ;;  %2171 = vmatpush3.bf16.msra.mxu1 %v2437_v49 }
  0x81   :  { %2178 = vmatprep.subr.bf16.mxu0 %v2434_v45  ;;  %2200 = vmatprep.subr.bf16.mxu1 %v2442_v50 }
  0x83   :  { %2389 = vset.pattern.permute.xlu1 %v2724_v51  ;;  %2399 = vset.pattern.permute.xlu0 %v2725_v52 }
  0x84   :  { %269 = vperm.xlu1 %2389, %v2832_v2   ;;  %409 = vperm.xlu0 %2399, %v2832_v2  }
  0x88   :  { %2391 = vset.pattern.permute.xlu1 %v2726_v53  ;;  %2401 = vset.pattern.permute.xlu0 %v2727_v54 }
  0x89   :  { %302 = vperm.xlu1 %2391, %v2832_v2  }
  0x8d   :  { %2392 = vset.pattern.permute.xlu1 %v2728_v55 }
  0x8e   :  { %317 = vperm.xlu1 %2392, %v2832_v2  }
  0x92   :  { %2394 = vset.pattern.permute.xlu1 %v2729_v56 }
  0x93   :  { %357 = vperm.xlu1 %2394, %v2832_v2  }
  0x97   :  { %2395 = vset.pattern.permute.xlu1 %v2730_v57 }
  0x98   :  { %366 = vperm.xlu1 %2395, %v2832_v2  }
  0x9c   :  { %2397 = vset.pattern.permute.xlu1 %v2731_v58 }
  0x9d   :  { %386 = vperm.xlu1 %2397, %v2832_v2  }
  0xa1   :  { %2398 = vset.pattern.permute.xlu1 %v2732_v59 }
  0xa2   :  { %347 = vperm.xlu1 %2398, %v2832_v2  }
  0xa6   :  { %2400 = vset.pattern.permute.xlu1 %v2727_v54 }
  0xa7   :  { %424 = vperm.xlu1 %2400, %v2832_v2   ;;  %v2876_v2 = vsub.s32 1, %v2859_v61 }
  0xa9   :  { %v115_v18 = vrot.slane %v2864_v63, %v2876_v2  ;;  %v120_v24 = vrot.slane %v2878_v6, %v2876_v2 }
  0xdb   :  { %v163_v4 = vpop.permute.xlu1 %162  ;;  %v144_v5 = vpop.permute.xlu0 %143 }
  0xdc   :  { %v150_v15 = vmul.f32 %v149_v9, %v144_v5  ;;  %v169_v20 = vmul.f32 %v2891_v11, %v163_v4  ;;  %v190_v37 = vmul.f32 %v163_v4, %v158_v10  ;;  %v204_v45 = vmul.f32 %v163_v4, %v149_v9 }
  0xe0   :  { %v93_v13 = vpop.permute.xlu1 %92  ;;  %v153_v14 = vpop.permute.xlu0 %152 }
  0xe1   :  { %v99_v16 = vmul.f32 %v98_v8, %v93_v13  ;;  %v159_v17 = vmul.f32 %v158_v10, %v153_v14  ;;  %v189_v34 = vmul.f32 %v153_v14, %v149_v9 }
  0xe3   :  { %v104_v21 = vadd.f32 %v103_v12, %v99_v16  ;;  %v160_v22 = vadd.f32 %v159_v17, %v150_v15  ;;  %v191_v46 = vadd.f32 %v190_v37, %v189_v34 }
  0xe5   :  { %v105_v25 = vmax.f32 %v104_v21, 0.0  ;;  %v170_v26 = vadd.f32 %v169_v20, %v160_v22  ;;  %v110_v27 = vpop.permute.xlu1 %109  ;;  %v173_v28 = vpop.permute.xlu0 %172 }
  0xe6   :  { %v116_v29 = vmul.f32 %v115_v18, %v110_v27  ;;  %v179_v31 = vmul.f32 %v2899_v19, %v173_v28  ;;  %v192_v41 = vmul.f32 %v173_v28, %v2891_v11  ;;  %v205_v42 = vmul.f32 %v173_v28, %v158_v10 }
  0xe7   :  { %v106_v32 = vpack.c.bf16 %v105_v25, %v105_v25  ;;  %v219_v54 = vmul.f32 %v173_v28, %v149_v9 }
  0xe8   :  { %v121_v35 = vadd.f32 %v120_v24, %v116_v29  ;;  %v180_v36 = vadd.f32 %v179_v31, %v170_v26  ;;  %v193_v52 = vadd.f32 %v192_v41, %v191_v46  ;;  %v206_v53 = vadd.f32 %v205_v42, %v204_v45  ;;  %v2436_v29 = vld [vmem:[#allocation9 + $0x100] sm:$0xff]   ;;  %v2441_v41 = vld [vmem:[#allocation9 + $0x108] sm:$0xff]  }
  0xe9   :  { %107 = vst [vmem:[#allocation2] sm:$0xf] %v106_v32  ;;  %v255_v26 = vsub.s32 7, %v2859_v61  ;;  %v2438_v32 = vld [vmem:[#allocation9 + $0x148] sm:$0xff]  }
  0xea   :  { %v122_v39 = vmax.f32 %v121_v35, 0.0  ;;  %v185_v40 = vadd.f32 %v2909_v30, %v180_v36  ;;  %v127_v43 = vpop.permute.xlu1 %126  ;;  %v211_v49 = vpop.permute.xlu0 %210 }
  0xeb   :  { %v133_v44 = vmul.f32 %v132_v33, %v127_v43  ;;  %v213_v57 = vmul.f32 %v211_v49, %v2899_v19  ;;  %v222_v58 = vmul.f32 %v211_v49, %v2891_v11  ;;  %v235_v59 = vmul.f32 %v211_v49, %v158_v10  ;;  %v2927_v33 = vld [vmem:[#allocation6 + $0x8] sm:$0xff] }
  0xec   :  { %v123_v47 = vpack.c.bf16 %v122_v39, %v122_v39  ;;  %v186_v48 = vmax.f32 %v185_v40, 0.0  ;;  %v2934_v42 = vrot.slane %v2864_v63, %v255_v26  ;;  %v2444_v49 = vld [vmem:[#allocation9 + $0x150] sm:$0xff]  }
  0xed   :  { %v138_v50 = vadd.f32 %v137_v38, %v133_v44  ;;  %v2938_v44 = vrot.slane %v2927_v33, %v2862_v62  ;;  %v2445_v63 = vld [vmem:[#allocation9 + $0x110] sm:$0xff]  }
  0xee   :  { %124 = vst [vmem:[#allocation2 + $0x4] sm:$0xf] %v123_v47  ;;  %v187_v51 = vpack.c.bf16 %v186_v48, %v186_v48  ;;  %v2443_v48 = vld [vmem:[#allocation9 + $0x180] sm:$0xff]  }
  0xef   :  { %v139_v55 = vmax.f32 %v138_v50, 0.0  ;;  %v196_v56 = vpop.permute.xlu1 %195  ;;  %v251_v43 = vpop.permute.xlu0 %250  ;;  %v2446_v50 = vld [vmem:[#allocation9 + $0x1c8] sm:$0xff]  }
  0xf0   :  { %188 = vst [vmem:[#allocation2 + $0xc] sm:$0xf] %v187_v51  ;;  %v198_v60 = vmul.f32 %v196_v56, %v2899_v19  ;;  %v207_v4 = vmul.f32 %v196_v56, %v2891_v11  ;;  %v220_v5 = vmul.f32 %v196_v56, %v158_v10  ;;  %v234_v8 = vmul.f32 %v196_v56, %v149_v9  ;;  %v2447_v56 = vld [vmem:[#allocation9 + $0x188] sm:$0xff]  }
  0xf1   :  { %v140_v12 = vpack.c.bf16 %v139_v55, %v139_v55  ;;  %v257_v62 = vmul.f32 %v2934_v42, %v251_v43  ;;  %v2948_v55 = vrot.slane %v2927_v33, %v2903_v23  ;;  %v2461_v43 = vld [vmem:[#allocation9 + $0x1a0] sm:$0xff]  }
  0xf2   :  { %v199_v13 = vadd.f32 %v198_v60, %v193_v52  ;;  %v208_v14 = vadd.f32 %v207_v4, %v206_v53  ;;  %v221_v15 = vadd.f32 %v220_v5, %v219_v54  ;;  %v236_v20 = vadd.f32 %v235_v59, %v234_v8  ;;  %v2450_v59 = vld [vmem:[#allocation9 + $0x1d0] sm:$0xff]   ;;  %v2449_v5 = vld [vmem:[#allocation9 + $0x118] sm:$0xff]  }
  0xf3   :  { %141 = vst [vmem:[#allocation2 + $0x8] sm:$0xf] %v140_v12  ;;  %v2944_v54 = vrot.slane %v2927_v33, %v2876_v2  ;;  %v2453_v12 = vld [vmem:[#allocation9 + $0x190] sm:$0xff]  }
  0xf4   :  { %v200_v16 = vadd.f32 %v199_v13, %v2909_v30  ;;  %v214_v17 = vadd.f32 %v213_v57, %v208_v14  ;;  %v223_v18 = vadd.f32 %v222_v58, %v221_v15  ;;  %v226_v21 = vpop.permute.xlu1 %225  ;;  %v2448_v57 = vld [vmem:[#allocation9 + $0x158] sm:$0xff]   ;;  %v280_v60 = vpop.permute.xlu0 %279  ;;  %v2454_v13 = vld [vmem:[#allocation9 + $0x160] sm:$0xff]  }
  0xf5   :  { %v228_v22 = vmul.f32 %v226_v21, %v2899_v19  ;;  %v237_v24 = vmul.f32 %v226_v21, %v2891_v11  ;;  %v433_v25 = vld [vmem:[#allocation2] sm:$0xff]  ;;  %v286_v15 = vmul.f32 %v2948_v55, %v280_v60 }
  0xf6   :  { %v201_v10 = vmax.f32 %v200_v16, 0.0  ;;  %v215_v9 = vadd.f32 %v214_v17, %v2909_v30  ;;  %v1982_v27 = vcombine.low %v433_v25, %v433_v25  ;;  %v1983_v28 = vcombine.high %v433_v25, %v433_v25  ;;  %v2455_v25 = vld [vmem:[#allocation9 + $0x120] sm:$0xff]  }
  0xf7   :  { %v229_v31 = vadd.f32 %v228_v22, %v223_v18  ;;  %v238_v36 = vadd.f32 %v237_v24, %v236_v20  ;;  %v299_v16 = vmul.f32 %v280_v60, %v2944_v54  ;;  %v2456_v18 = vld [vmem:[#allocation9 + $0x1d8] sm:$0xff]   ;;  %v312_v22 = vmul.f32 %v280_v60, %v2938_v44 }
  0xf8   :  { %v202_v34 = vpack.c.bf16 %v201_v10, %v201_v10  ;;  %v216_v35 = vmax.f32 %v215_v9, 0.0  ;;  %1557 = vmatprep.mubr.bf16.mxu0 %v1983_v28  ;;  %v2457_v28 = vld [vmem:[#allocation9 + $0x198] sm:$0xff]  }
  0xf9   :  { %v230_v37 = vadd.f32 %v229_v31, %v2909_v30  ;;  %1558 = vmatmul.mubr.bf16.vlgmr.msra.gmra.mrb[0].mxu0 %v1982_v27  ;;  %v241_v11 = vpop.permute.xlu1 %240  ;;  %v2964_v27 = vrot.slane %v2878_v6, %v2870_v1  ;;  %v2460_v31 = vld [vmem:[#allocation9 + $0x1e0] sm:$0xff]  }
  0xfa   :  { %203 = vst [vmem:[#allocation2 + $0x10] sm:$0xf] %v202_v34  ;;  %v217_v38 = vpack.c.bf16 %v216_v35, %v216_v35  ;;  %2179 = vmatpush3.bf16.msra.mxu0 %v2436_v29  ;;  %v243_v39 = vmul.f32 %v241_v11, %v2899_v19  ;;  %v434_v40 = vld [vmem:[#allocation2 + $0x8] sm:$0xff] }
  0xfb   :  { %v231_v45 = vmax.f32 %v230_v37, 0.0  ;;  %2180 = vmatprep.subr.bf16.mxu0 %v2438_v32  ;;  %v1984_v46 = vcombine.low %v434_v40, %v434_v40  ;;  %v1985_v47 = vcombine.high %v434_v40, %v434_v40  ;;  %v2458_v29 = vld [vmem:[#allocation9 + $0x168] sm:$0xff]   ;;  %v326_v37 = vmul.f32 %v280_v60, %v2934_v42 }
  0xfc   :  { %218 = vst [vmem:[#allocation2 + $0x14] sm:$0xf] %v217_v38  ;;  %v244_v19 = vadd.f32 %v243_v39, %v238_v36  ;;  %v2459_v40 = vld [vmem:[#allocation9 + $0x128] sm:$0xff]  }
  0xfd   :  { %v232_v51 = vpack.c.bf16 %v231_v45, %v231_v45  ;;  %1597 = vmatprep.mubr.bf16.mxu1 %v1985_v47 }
  0xfe   :  { %v245_v52 = vadd.f32 %v244_v19, %v2909_v30  ;;  %2181 = vmatpush3.bf16.msra.mxu0 %v2441_v41  ;;  %1598 = vmatmul.mubr.bf16.vlgmr.msra.gmra.mrb[0].mxu1 %v1984_v46  ;;  %v260_v53 = vpop.permute.xlu1 %259  ;;  %v2464_v46 = vld [vmem:[#allocation9 + $0x170] sm:$0xff]   ;;  %v2466_v19 = vld [vmem:[#allocation9 + $0x1e8] sm:$0xff]  }
  0xff   :  { %233 = vst [vmem:[#allocation2 + $0x18] sm:$0xf] %v232_v51  ;;  %2201 = vmatpush3.bf16.msra.mxu1 %v2443_v48  ;;  %2182 = vmatprep.subr.bf16.mxu0 %v2444_v49  ;;  %v266_v30 = vmul.f32 %v2938_v44, %v260_v53  ;;  %v296_v2 = vmul.f32 %v260_v53, %v2934_v42  ;;  %v2978_v48 = vpop.permute.xlu0 %332 }
 0x100   :  { %v246_v58 = vmax.f32 %v245_v52, 0.0  ;;  %2202 = vmatprep.subr.bf16.mxu1 %v2446_v50 }
 0x101   :  { %v267_v8 = vadd.f32 %v266_v30, %v257_v62  ;;  %v2465_v62 = vld [vmem:[#allocation9 + $0x130] sm:$0xff]   ;;  %v335_v30 = vmul.f32 %v2978_v48, %v2948_v55 }
 0x102   :  { %v247_v4 = vpack.c.bf16 %v246_v58, %v246_v58  ;;  %2183 = vmatpush3.bf16.msra.mxu0 %v2445_v63  ;;  %v2467_v58 = vld [vmem:[#allocation9 + $0x1a8] sm:$0xff]  }
 0x103   :  { %2203 = vmatpush3.bf16.msra.mxu1 %v2447_v56  ;;  %2184 = vmatprep.subr.bf16.mxu0 %v2448_v57  ;;  %v2952_v23 = vld [vmem:[#allocation2 + $0x10] sm:$0xff]  ;;  %v270_v14 = vpop.permute.xlu1 %269 }
 0x104   :  { %248 = vst [vmem:[#allocation2 + $0x1c] sm:$0xf] %v247_v4  ;;  %2204 = vmatprep.subr.bf16.mxu1 %v2450_v59  ;;  %v1987_v17 = vcombine.high %v2952_v23, %v2952_v23  ;;  %v276_v20 = vmul.f32 %v2944_v54, %v270_v14  ;;  %v297_v21 = vmul.f32 %v270_v14, %v2938_v44  ;;  %v2468_v59 = vld [vmem:[#allocation9 + $0x178] sm:$0xff]  }
 0x105   :  { %v311_v24 = vmul.f32 %v270_v14, %v2934_v42  ;;  %v363_v14 = vrot.slane %v2927_v33, %v2867_v0  ;;  %v372_v0 = vrot.slane %v2927_v33, %v2870_v1 }
 0x106   :  { %2185 = vmatpush3.bf16.msra.mxu0 %v2449_v5  ;;  %1637 = vmatprep.mubr.bf16.mxu0 %v1987_v17  ;;  %v298_v10 = vadd.f32 %v297_v21, %v296_v2  ;;  %v277_v9 = vadd.f32 %v276_v20, %v267_v8  ;;  %v2470_v5 = vld [vmem:[#allocation9 + $0x1f0] sm:$0xff]   ;;  %v2472_v21 = vld [vmem:[#allocation9 + $0x240] sm:$0xff]  }
 0x107   :  { %2205 = vmatpush3.bf16.msra.mxu1 %v2453_v12  ;;  %2186 = vmatprep.subr.bf16.mxu0 %v2454_v13  ;;  %v313_v36 = vadd.f32 %v312_v22, %v311_v24  ;;  %v2469_v13 = vld [vmem:[#allocation9 + $0x138] sm:$0xff]   ;;  %v2471_v20 = vld [vmem:[#allocation9 + $0x1b0] sm:$0xff]   ;;  %v377_v22 = vpop.permute.xlu0 %376 }
 0x108   :  { %2206 = vmatprep.subr.bf16.mxu1 %v2456_v18  ;;  %v2966_v32 = vpop.permute.xlu1 %302  ;;  %v287_v34 = vadd.f32 %v286_v15, %v277_v9  ;;  %v300_v35 = vadd.f32 %v299_v16, %v298_v10  ;;  %v2992_v18 = vrot.slane %v2927_v33, %v2873_v3  ;;  %v2473_v24 = vld [vmem:[#allocation9 + $0x1f8] sm:$0xff]  }
 0x109   :  { %v305_v11 = vmul.f32 %v2966_v32, %v2948_v55  ;;  %v314_v38 = vmul.f32 %v2966_v32, %v2944_v54  ;;  %v327_v39 = vmul.f32 %v2966_v32, %v2938_v44 }
 0x10a   :  { %2187 = vmatpush3.bf16.msra.mxu0 %v2455_v25  ;;  %v292_v41 = vadd.f32 %v2964_v27, %v287_v34  ;;  %v383_v34 = vmul.f32 %v2992_v18, %v377_v22 }
 0x10b   :  { %2207 = vmatpush3.bf16.msra.mxu1 %v2457_v28  ;;  %2188 = vmatprep.subr.bf16.mxu0 %v2458_v29  ;;  %v2976_v45 = vld [vmem:[#allocation2 + $0x18] sm:$0xff]  ;;  %v306_v47 = vadd.f32 %v305_v11, %v300_v35  ;;  %v315_v51 = vadd.f32 %v314_v38, %v313_v36  ;;  %v328_v52 = vadd.f32 %v327_v39, %v326_v37  ;;  %v2474_v28 = vld [vmem:[#allocation9 + $0x200] sm:$0xff]   ;;  %v2476_v11 = vld [vmem:[#allocation9 + $0x248] sm:$0xff]  }
 0x10c   :  { %2208 = vmatprep.subr.bf16.mxu1 %v2460_v31  ;;  %v1989_v49 = vcombine.high %v2976_v45, %v2976_v45  ;;  %v293_v50 = vmax.f32 %v292_v41, 0.0  ;;  %v1986_v35 = vcombine.low %v2952_v23, %v2952_v23  ;;  %v341_v36 = vmul.f32 %v2966_v32, %v2934_v42  ;;  %v2475_v37 = vld [vmem:[#allocation9 + $0x1b8] sm:$0xff]   ;;  %v2477_v32 = vld [vmem:[#allocation9 + $0x208] sm:$0xff]  }
 0x10d   :  { %v318_v63 = vpop.permute.xlu1 %317  ;;  %v307_v53 = vadd.f32 %v306_v47, %v2964_v27  ;;  %v404_v38 = vmul.f32 %v377_v22, %v372_v0  ;;  %v3005_v23 = vrot.slane %v2927_v33, %v2881_v7  ;;  %v3009_v47 = vrot.slane %v2878_v6, %v2873_v3 }
 0x10e   :  { %2189 = vmatpush3.bf16.msra.mxu0 %v2459_v40  ;;  %1677 = vmatprep.mubr.bf16.mxu1 %v1989_v49  ;;  %v320_v56 = vmul.f32 %v318_v63, %v2948_v55  ;;  %v329_v57 = vmul.f32 %v318_v63, %v2944_v54  ;;  %v294_v60 = vpack.c.bf16 %v293_v50, %v293_v50  ;;  %v2479_v49 = vld [vmem:[#allocation9 + $0x280] sm:$0xff]   ;;  %v2480_v50 = vld [vmem:[#allocation9 + $0x250] sm:$0xff]  }
 0x10f   :  { %2209 = vmatpush3.bf16.msra.mxu1 %v2461_v43  ;;  %2190 = vmatprep.subr.bf16.mxu0 %v2464_v46  ;;  %v308_v4 = vmax.f32 %v307_v53, 0.0  ;;  %v342_v39 = vmul.f32 %v318_v63, %v2938_v44  ;;  %v2478_v43 = vld [vmem:[#allocation9 + $0x2c0] sm:$0xff]   ;;  %v2482_v53 = vld [vmem:[#allocation9 + $0x2c8] sm:$0xff]  }
 0x110   :  { %2210 = vmatprep.subr.bf16.mxu1 %v2466_v19  ;;  %v321_v2 = vadd.f32 %v320_v56, %v315_v51  ;;  %v330_v8 = vadd.f32 %v329_v57, %v328_v52  ;;  %295 = vst [vmem:[#allocation2 + $0x20] sm:$0xf] %v294_v60  ;;  %v344_v19 = vmul.f32 %v2978_v48, %v2944_v54  ;;  %v410_v57 = vpop.permute.xlu0 %409 }
 0x111   :  { %v309_v12 = vpack.c.bf16 %v308_v4, %v308_v4  ;;  %v1988_v52 = vcombine.low %v2976_v45, %v2976_v45  ;;  %v343_v63 = vadd.f32 %v342_v39, %v341_v36  ;;  %v418_v56 = vmul.f32 %v377_v22, %v363_v14  ;;  %v2483_v45 = vld [vmem:[#allocation9 + $0x288] sm:$0xff]   ;;  %v2484_v4 = vld [vmem:[#allocation9 + $0x258] sm:$0xff]   ;;  %v2494_v39 = vld [vmem:[#allocation9 + $0x2e0] sm:$0xff]  }
 0x112   :  { %2191 = vmatpush3.bf16.msra.mxu0 %v2465_v62  ;;  %v358_v15 = vpop.permute.xlu1 %357  ;;  %v322_v16 = vadd.f32 %v321_v2, %v2964_v27  ;;  %v336_v17 = vadd.f32 %v335_v30, %v330_v8  ;;  %v412_v48 = vmul.f32 %v410_v57, %v3005_v23  ;;  %v2486_v8 = vld [vmem:[#allocation9 + $0x2d0] sm:$0xff]   ;;  %v2491_v36 = vld [vmem:[#allocation9 + $0x298] sm:$0xff]  }
 0x113   :  { %2211 = vmatpush3.bf16.msra.mxu1 %v2467_v58  ;;  %2192 = vmatprep.subr.bf16.mxu0 %v2468_v59  ;;  %310 = vst [vmem:[#allocation2 + $0x24] sm:$0xf] %v309_v12  ;;  %v364_v9 = vmul.f32 %v363_v14, %v358_v15  ;;  %v2481_v59 = vld [vmem:[#allocation9 + $0x210] sm:$0xff]   ;;  %v345_v2 = vadd.f32 %v344_v19, %v343_v63  ;;  %v2501_v19 = vld [vmem:[#allocation9 + $0x2a8] sm:$0xff]  }
 0x114   :  { %2212 = vmatprep.subr.bf16.mxu1 %v2470_v5  ;;  %v323_v25 = vmax.f32 %v322_v16, 0.0  ;;  %v337_v10 = vadd.f32 %v336_v17, %v2964_v27  ;;  %v421_v17 = vmul.f32 %v410_v57, %v2992_v18  ;;  %v2507_v63 = vld [vmem:[#allocation9 + $0x2b0] sm:$0xff]  }
 0x116   :  { %2193 = vmatpush3.bf16.msra.mxu0 %v2469_v13  ;;  %v324_v29 = vpack.c.bf16 %v323_v25, %v323_v25  ;;  %v338_v31 = vmax.f32 %v337_v10, 0.0  ;;  %v2487_v25 = vld [vmem:[#allocation9 + $0x290] sm:$0xff]  }
 0x117   :  { %2213 = vmatpush3.bf16.msra.mxu1 %v2471_v20  ;;  %2222 = vmatprep.subr.bf16.mxu0 %v2472_v21  ;;  %v367_v1 = vpop.permute.xlu1 %366  ;;  %v2485_v21 = vld [vmem:[#allocation9 + $0x218] sm:$0xff]  }
 0x118   :  { %2214 = vmatprep.subr.bf16.mxu1 %v2473_v24  ;;  %325 = vst [vmem:[#allocation2 + $0x28] sm:$0xf] %v324_v29  ;;  %v373_v40 = vmul.f32 %v372_v0, %v367_v1  ;;  %v403_v41 = vmul.f32 %v367_v1, %v363_v14  ;;  %v339_v46 = vpack.c.bf16 %v338_v31, %v338_v31 }
 0x119   :  { %1638 = vmatmul.mubr.bf16.vlgmr.msra.gmra.mrb[4].mxu0 %v1986_v35 }
 0x11a   :  { %2223 = vmatpush3.bf16.msra.mxu0 %v2474_v28  ;;  %v374_v42 = vadd.f32 %v373_v40, %v364_v9  ;;  %340 = vst [vmem:[#allocation2 + $0x2c] sm:$0xf] %v339_v46  ;;  %v3011_v44 = vld [vmem:[#allocation2 + $0x20] sm:$0xff]  ;;  %v405_v51 = vadd.f32 %v404_v38, %v403_v41  ;;  %v2490_v28 = vld [vmem:[#allocation9 + $0x2d8] sm:$0xff]   ;;  %v2496_v46 = vld [vmem:[#allocation9 + $0x270] sm:$0xff]  }
 0x11b   :  { %2215 = vmatpush3.bf16.msra.mxu1 %v2475_v37  ;;  %2224 = vmatprep.subr.bf16.mxu0 %v2476_v11  ;;  %v1991_v33 = vcombine.high %v3011_v44, %v3011_v44  ;;  %v2492_v37 = vld [vmem:[#allocation9 + $0x268] sm:$0xff]   ;;  %v1990_v57 = vcombine.low %v3011_v44, %v3011_v44 }
 0x11c   :  { %2244 = vmatprep.subr.bf16.mxu1 %v2478_v43  ;;  %v387_v3 = vpop.permute.xlu1 %386  ;;  %v384_v62 = vadd.f32 %v383_v34, %v374_v42  ;;  %v2489_v34 = vld [vmem:[#allocation9 + $0x220] sm:$0xff]   ;;  %v2493_v43 = vld [vmem:[#allocation9 + $0x228] sm:$0xff]  }
 0x11d   :  { %v393_v30 = vmul.f32 %v3005_v23, %v387_v3  ;;  %v406_v58 = vmul.f32 %v387_v3, %v2992_v18  ;;  %v419_v54 = vmul.f32 %v387_v3, %v372_v0  ;;  %1717 = vmatprep.mubr.bf16.mxu0 %v1991_v33  ;;  %v2488_v0 = vld [vmem:[#allocation9 + $0x260] sm:$0xff]   ;;  %v2504_v33 = vld [vmem:[#allocation9 + $0x2f0] sm:$0xff]   ;;  %v2520_v44 = vld [vmem:[#allocation9 + $0x3c8] sm:$0xff]  }
 0x11e   :  { %1678 = vmatmul.mubr.bf16.vlgmr.msra.gmra.mrb[4].mxu1 %v1988_v52  ;;  %2225 = vmatpush3.bf16.msra.mxu0 %v2477_v32  ;;  %v2500_v32 = vld [vmem:[#allocation9 + $0x2e8] sm:$0xff]   ;;  %v2503_v52 = vld [vmem:[#allocation9 + $0x238] sm:$0xff]  }
 0x11f   :  { %2245 = vmatpush3.bf16.msra.mxu1 %v2479_v49  ;;  %2226 = vmatprep.subr.bf16.mxu0 %v2480_v50  ;;  %v394_v60 = vadd.f32 %v393_v30, %v384_v62  ;;  %v407_v5 = vadd.f32 %v406_v58, %v405_v51  ;;  %v420_v13 = vadd.f32 %v419_v54, %v418_v56  ;;  %v2502_v50 = vld [vmem:[#allocation9 + $0x278] sm:$0xff]   ;;  %v2510_v62 = vld [vmem:[#allocation9 + $0x300] sm:$0xff]   ;;  %v2514_v58 = vld [vmem:[#allocation9 + $0x348] sm:$0xff]  }
 0x120   :  { %2246 = vmatprep.subr.bf16.mxu1 %v2482_v53  ;;  %v2509_v53 = vld [vmem:[#allocation9 + $0x2f8] sm:$0xff]   ;;  %v2516_v54 = vld [vmem:[#allocation9 + $0x3c0] sm:$0xff]  }
 0x121   :  { %v399_v12 = vadd.f32 %v3009_v47, %v394_v60  ;;  %v348_v14 = vpop.permute.xlu1 %347  ;;  %v3023_v15 = vld [vmem:[#allocation2 + $0x28] sm:$0xff]  ;;  %v413_v16 = vadd.f32 %v412_v48, %v407_v5  ;;  %v422_v31 = vadd.f32 %v421_v17, %v420_v13  ;;  %v2511_v30 = vld [vmem:[#allocation9 + $0x2b8] sm:$0xff]   ;;  %v2518_v60 = vld [vmem:[#allocation9 + $0x350] sm:$0xff]  }
 0x122   :  { %2227 = vmatpush3.bf16.msra.mxu0 %v2481_v59  ;;  %v350_v20 = vmul.f32 %v348_v14, %v2948_v55  ;;  %v1993_v22 = vcombine.high %v3023_v15, %v3023_v15  ;;  %v2515_v59 = vld [vmem:[#allocation9 + $0x308] sm:$0xff]   ;;  %v2524_v13 = vld [vmem:[#allocation9 + $0x3d0] sm:$0xff]   ;;  %v2523_v14 = vld [vmem:[#allocation9 + $0x318] sm:$0xff]  }
 0x123   :  { %2247 = vmatpush3.bf16.msra.mxu1 %v2483_v45  ;;  %v400_v24 = vmax.f32 %v399_v12, 0.0  ;;  %2228 = vmatprep.subr.bf16.mxu0 %v2484_v4  ;;  %v414_v10 = vadd.f32 %v413_v16, %v3009_v47  ;;  %v2517_v45 = vld [vmem:[#allocation9 + $0x380] sm:$0xff]   ;;  %v1992_v4 = vcombine.low %v3023_v15, %v3023_v15  ;;  %v2522_v12 = vld [vmem:[#allocation9 + $0x358] sm:$0xff]   ;;  %v2525_v15 = vld [vmem:[#allocation9 + $0x390] sm:$0xff]  }
 0x124   :  { %v351_v9 = vadd.f32 %v350_v20, %v345_v2  ;;  %2248 = vmatprep.subr.bf16.mxu1 %v2486_v8  ;;  %1757 = vmatprep.mubr.bf16.mxu1 %v1993_v22  ;;  %v2519_v2 = vld [vmem:[#allocation9 + $0x310] sm:$0xff]   ;;  %v2521_v8 = vld [vmem:[#allocation9 + $0x388] sm:$0xff]   ;;  %v2526_v16 = vld [vmem:[#allocation9 + $0x360] sm:$0xff]  }
 0x125   :  { %v401_v29 = vpack.c.bf16 %v400_v24, %v400_v24  ;;  %v415_v18 = vmax.f32 %v414_v10, 0.0  ;;  %v2528_v17 = vld [vmem:[#allocation9 + $0x3d8] sm:$0xff]   ;;  %v2527_v20 = vld [vmem:[#allocation9 + $0x320] sm:$0xff]   ;;  %v2530_v22 = vld [vmem:[#allocation9 + $0x368] sm:$0xff]  }
 0x126   :  { %v352_v55 = vadd.f32 %v351_v9, %v2964_v27  ;;  %2229 = vmatpush3.bf16.msra.mxu0 %v2485_v21  ;;  %v425_v35 = vpop.permute.xlu1 %424  ;;  %v2495_v27 = vld [vmem:[#allocation9 + $0x2a0] sm:$0xff]   ;;  %v2529_v21 = vld [vmem:[#allocation9 + $0x398] sm:$0xff]   ;;  %v2534_v10 = vld [vmem:[#allocation9 + $0x370] sm:$0xff]  }
 0x127   :  { %402 = vst [vmem:[#allocation2 + $0x34] sm:$0xf] %v401_v29  ;;  %2249 = vmatpush3.bf16.msra.mxu1 %v2487_v25  ;;  %2230 = vmatprep.subr.bf16.mxu0 %v2488_v0  ;;  %v416_v11 = vpack.c.bf16 %v415_v18, %v415_v18  ;;  %v427_v1 = vmul.f32 %v425_v35, %v3005_v23  ;;  %v2499_v23 = vld [vmem:[#allocation9 + $0x230] sm:$0xff]   ;;  %v2532_v24 = vld [vmem:[#allocation9 + $0x3e0] sm:$0xff]   ;;  %v2531_v25 = vld [vmem:[#allocation9 + $0x328] sm:$0xff]  }
 0x128   :  { %v353_v38 = vmax.f32 %v352_v55, 0.0  ;;  %2250 = vmatprep.subr.bf16.mxu1 %v2490_v28  ;;  %v2533_v0 = vld [vmem:[#allocation9 + $0x3a0] sm:$0xff]   ;;  %v2536_v9 = vld [vmem:[#allocation9 + $0x3e8] sm:$0xff]   ;;  %v2535_v28 = vld [vmem:[#allocation9 + $0x330] sm:$0xff]  }
 0x129   :  { %417 = vst [vmem:[#allocation2 + $0x38] sm:$0xf] %v416_v11  ;;  %v428_v40 = vadd.f32 %v427_v1, %v422_v31  ;;  %v2539_v29 = vld [vmem:[#allocation9 + $0x3a8] sm:$0xff]   ;;  %v2540_v18 = vld [vmem:[#allocation9 + $0x378] sm:$0xff]   ;;  %v2542_v31 = vld [vmem:[#allocation9 + $0x3f0] sm:$0xff]  }
 0x12a   :  { %v354_v41 = vpack.c.bf16 %v353_v38, %v353_v38  ;;  %2231 = vmatpush3.bf16.msra.mxu0 %v2489_v34  ;;  %v2541_v55 = vld [vmem:[#allocation9 + $0x338] sm:$0xff]   ;;  %v2543_v34 = vld [vmem:[#allocation9 + $0x3b0] sm:$0xff]   ;;  %v2546_v1 = vld [vmem:[#allocation11] sm:$0xff]   ;;  %v2733_v38 = vmov 0.0  }
 0x12b   :  { %2251 = vmatpush3.bf16.msra.mxu1 %v2491_v36  ;;  %2232 = vmatprep.subr.bf16.mxu0 %v2492_v37  ;;  %v429_v42 = vadd.f32 %v428_v40, %v3009_v47  ;;  %v2508_v47 = vld [vmem:[#allocation9 + $0x340] sm:$0xff]   ;;  %v2544_v35 = vld [vmem:[#allocation9 + $0x3f8] sm:$0xff]   ;;  %v2548_v40 = vld [vmem:[#allocation11 + $0x10] sm:$0xff]  }
 0x12c   :  { %355 = vst [vmem:[#allocation2 + $0x30] sm:$0xf] %v354_v41  ;;  %2252 = vmatprep.subr.bf16.mxu1 %v2494_v39  ;;  %v2545_v37 = vld [vmem:[#allocation9 + $0x3b8] sm:$0xff]   ;;  %v2547_v39 = vld [vmem:[#allocation11 + $0x8] sm:$0xff]  }
 0x12d   :  { %v430_v49 = vmax.f32 %v429_v42, 0.0  ;;  %v2549_v41 = vld [vmem:[#allocation11 + $0x18] sm:$0xff]  }
 0x12e   :  { %2233 = vmatpush3.bf16.msra.mxu0 %v2493_v43  ;;  %v2550_v43 = vld [vmem:[#allocation11 + $0x20] sm:$0xff]   ;;  %v2553_v42 = vld [vmem:[#allocation11 + $0x38] sm:$0xff]  }
 0x12f   :  { %2253 = vmatpush3.bf16.msra.mxu1 %v2495_v27  ;;  %2234 = vmatprep.subr.bf16.mxu0 %v2496_v46  ;;  %v431_v51 = vpack.c.bf16 %v430_v49, %v430_v49  ;;  %v2551_v27 = vld [vmem:[#allocation11 + $0x28] sm:$0xff]   ;;  %v2552_v46 = vld [vmem:[#allocation11 + $0x30] sm:$0xff]  }
 0x130   :  { %2254 = vmatprep.subr.bf16.mxu1 %v2500_v32 }
 0x131   :  { %432 = vst [vmem:[#allocation2 + $0x3c] sm:$0xf] %v431_v51 }
 0x132   :  { %2235 = vmatpush3.bf16.msra.mxu0 %v2499_v23 }
 0x133   :  { %2255 = vmatpush3.bf16.msra.mxu1 %v2501_v19  ;;  %2236 = vmatprep.subr.bf16.mxu0 %v2502_v50  ;;  %v3033_v3 = vld [vmem:[#allocation2 + $0x30] sm:$0xff]  ;;  %v700_v50 = vrot.slane %v2878_v6, %v2881_v7 }
 0x134   :  { %2256 = vmatprep.subr.bf16.mxu1 %v2504_v33  ;;  %v1995_v56 = vcombine.high %v3033_v3, %v3033_v3  ;;  %v1994_v36 = vcombine.low %v3033_v3, %v3033_v3 }
 0x136   :  { %2237 = vmatpush3.bf16.msra.mxu0 %v2503_v52 }
 0x137   :  { %2257 = vmatpush3.bf16.msra.mxu1 %v2507_v63  ;;  %2266 = vmatprep.subr.bf16.mxu0 %v2508_v47 }
 0x138   :  { %2258 = vmatprep.subr.bf16.mxu1 %v2509_v53  ;;  %v3039_v48 = vld [vmem:[#allocation2 + $0x38] sm:$0xff] }
 0x139   :  { %1718 = vmatmul.mubr.bf16.vlgmr.msra.gmra.mrb[8].mxu0 %v1990_v57  ;;  %v1997_v5 = vcombine.high %v3039_v48, %v3039_v48  ;;  %v1996_v11 = vcombine.low %v3039_v48, %v3039_v48 }
 0x13a   :  { %2267 = vmatpush3.bf16.msra.mxu0 %v2510_v62  ;;  %1797 = vmatprep.mubr.bf16.mxu0 %v1995_v56 }
 0x13b   :  { %2259 = vmatpush3.bf16.msra.mxu1 %v2511_v30  ;;  %2268 = vmatprep.subr.bf16.mxu0 %v2514_v58 }
 0x13c   :  { %2288 = vmatprep.subr.bf16.mxu1 %v2516_v54 }
 0x13e   :  { %1758 = vmatmul.mubr.bf16.vlgmr.msra.gmra.mrb[8].mxu1 %v1992_v4  ;;  %2269 = vmatpush3.bf16.msra.mxu0 %v2515_v59 }
 0x13f   :  { %2289 = vmatpush3.bf16.msra.mxu1 %v2517_v45  ;;  %2270 = vmatprep.subr.bf16.mxu0 %v2518_v60 }
 0x140   :  { %2290 = vmatprep.subr.bf16.mxu1 %v2520_v44  ;;  %1837 = vmatprep.mubr.bf16.mxu1 %v1997_v5 }
 0x142   :  { %2271 = vmatpush3.bf16.msra.mxu0 %v2519_v2 }
 0x143   :  { %2291 = vmatpush3.bf16.msra.mxu1 %v2521_v8  ;;  %2272 = vmatprep.subr.bf16.mxu0 %v2522_v12 }
 0x144   :  { %2292 = vmatprep.subr.bf16.mxu1 %v2524_v13 }
 0x146   :  { %2273 = vmatpush3.bf16.msra.mxu0 %v2523_v14 }
 0x147   :  { %2293 = vmatpush3.bf16.msra.mxu1 %v2525_v15  ;;  %2274 = vmatprep.subr.bf16.mxu0 %v2526_v16 }
 0x148   :  { %2294 = vmatprep.subr.bf16.mxu1 %v2528_v17 }
 0x14a   :  { %2275 = vmatpush3.bf16.msra.mxu0 %v2527_v20 }
 0x14b   :  { %2295 = vmatpush3.bf16.msra.mxu1 %v2529_v21  ;;  %2276 = vmatprep.subr.bf16.mxu0 %v2530_v22 }
 0x14c   :  { %2296 = vmatprep.subr.bf16.mxu1 %v2532_v24 }
 0x14e   :  { %2277 = vmatpush3.bf16.msra.mxu0 %v2531_v25 }
 0x14f   :  { %2297 = vmatpush3.bf16.msra.mxu1 %v2533_v0  ;;  %2278 = vmatprep.subr.bf16.mxu0 %v2534_v10 }
 0x150   :  { %2298 = vmatprep.subr.bf16.mxu1 %v2536_v9 }
 0x152   :  { %2279 = vmatpush3.bf16.msra.mxu0 %v2535_v28 }
 0x153   :  { %2299 = vmatpush3.bf16.msra.mxu1 %v2539_v29  ;;  %2280 = vmatprep.subr.bf16.mxu0 %v2540_v18 }
 0x154   :  { %2300 = vmatprep.subr.bf16.mxu1 %v2542_v31 }
 0x156   :  { %2281 = vmatpush3.bf16.msra.mxu0 %v2541_v55 }
 0x157   :  { %2301 = vmatpush3.bf16.msra.mxu1 %v2543_v34  ;;  %2319 = vmatprep.subr.bf16.mxu0 %v2733_v38 }
 0x158   :  { %2302 = vmatprep.subr.bf16.mxu1 %v2544_v35 }
 0x159   :  { %1798 = vmatmul.mubr.bf16.vlgmr.msra.gmra.mrb[12].mxu0 %v1994_v36 }
 0x15a   :  { %2320 = vmatpush3.bf16.msra.mxu0 %v2546_v1  ;;  %2335 = vmatprep.mubr.msk.bf16.mxu0 %vm2734_vm0, %v2733_v38 }
 0x15b   :  { %2303 = vmatpush3.bf16.msra.mxu1 %v2545_v37  ;;  %2321 = vmatprep.subr.bf16.mxu0 %v2733_v38  ;;  %v2558_v37 = vld [vmem:[#allocation8] sm:$0xff] }
 0x15e   :  { %1838 = vmatmul.mubr.bf16.vlgmr.msra.gmra.mrb[12].mxu1 %v1996_v11  ;;  %2322 = vmatpush3.bf16.msra.mxu0 %v2547_v39  ;;  %v1866_v11 = vrot.slane %v2558_v37, %v255_v26 }
 0x15f   :  { %2323 = vmatprep.subr.bf16.mxu0 %v2733_v38 }
 0x162   :  { %2324 = vmatpush3.bf16.msra.mxu0 %v2548_v40 }
 0x163   :  { %2325 = vmatprep.subr.bf16.mxu0 %v2733_v38 }
 0x166   :  { %2326 = vmatpush3.bf16.msra.mxu0 %v2549_v41 }
 0x167   :  { %2327 = vmatprep.subr.bf16.mxu0 %v2733_v38 }
 0x16a   :  { %2328 = vmatpush3.bf16.msra.mxu0 %v2550_v43 }
 0x16b   :  { %2329 = vmatprep.subr.bf16.mxu0 %v2733_v38 }
 0x16e   :  { %2330 = vmatpush3.bf16.msra.mxu0 %v2551_v27 }
 0x16f   :  { %2331 = vmatprep.subr.bf16.mxu0 %v2733_v38 }
 0x172   :  { %2332 = vmatpush3.bf16.msra.mxu0 %v2552_v46 }
 0x173   :  { %2333 = vmatprep.subr.bf16.mxu0 %v2733_v38 }
 0x176   :  { %2334 = vmatpush3.bf16.msra.mxu0 %v2553_v42 }
 0x1cc   :  { %v2150_v32 = vpop.f32.mrb[0].mxu0 }
 0x1cd   :  { %v2151_v49 = vpop.f32.mrb[1].mxu0 }
 0x1ce   :  { %v2152_v23 = vadd.f32 %v2151_v49, %v2150_v32  ;;  %v2153_v19 = vpop.f32.mrb[2].mxu0 }
 0x1cf   :  { %v2154_v51 = vpop.f32.mrb[3].mxu0 }
 0x1d0   :  { %v1560_v63 = vadd.f32 %v2152_v23, %v700_v50 }
 0x1d1   :  { %v2172_v33 = vpop.f32.mrb[0].mxu1 }
 0x1d2   :  { %v2173_v52 = vpop.f32.mrb[1].mxu1 }
 0x1d3   :  { %v2174_v47 = vadd.f32 %v2173_v52, %v2172_v33  ;;  %v2175_v3 = vpop.f32.mrb[2].mxu1 }
 0x1d4   :  { %v2176_v53 = vpop.f32.mrb[3].mxu1 }
 0x1d5   :  { %v1600_v62 = vadd.f32 %v2174_v47, %v1560_v63 }
 0x1ec   :  { %v2194_v56 = vpop.f32.mrb[4].mxu0 }
 0x1ed   :  { %v2195_v57 = vpop.f32.mrb[5].mxu0 }
 0x1ee   :  { %v2196_v30 = vadd.f32 %v2195_v57, %v2194_v56  ;;  %v2197_v58 = vpop.f32.mrb[6].mxu0 }
 0x1ef   :  { %v2198_v54 = vpop.f32.mrb[7].mxu0 }
 0x1f0   :  { %v1640_v48 = vadd.f32 %v2196_v30, %v1600_v62 }
 0x1f1   :  { %v2216_v59 = vpop.f32.mrb[4].mxu1 }
 0x1f2   :  { %v2217_v45 = vpop.f32.mrb[5].mxu1 }
 0x1f3   :  { %v2218_v60 = vadd.f32 %v2217_v45, %v2216_v59  ;;  %v2219_v4 = vpop.f32.mrb[6].mxu1 }
 0x1f4   :  { %v2220_v44 = vpop.f32.mrb[7].mxu1 }
 0x1f5   :  { %v1680_v6 = vadd.f32 %v2218_v60, %v1640_v48 }
 0x20c   :  { %v2238_v7 = vpop.f32.mrb[8].mxu0 }
 0x20d   :  { %v2239_v5 = vpop.f32.mrb[9].mxu0 }
 0x20e   :  { %v2240_v2 = vadd.f32 %v2239_v5, %v2238_v7  ;;  %v2241_v8 = vpop.f32.mrb[10].mxu0 }
 0x20f   :  { %v2242_v12 = vpop.f32.mrb[11].mxu0 }
 0x210   :  { %v1720_v13 = vadd.f32 %v2240_v2, %v1680_v6 }
 0x211   :  { %v2260_v14 = vpop.f32.mrb[8].mxu1 }
 0x212   :  { %v2261_v15 = vpop.f32.mrb[9].mxu1 }
 0x213   :  { %v2262_v16 = vadd.f32 %v2261_v15, %v2260_v14  ;;  %v2263_v17 = vpop.f32.mrb[10].mxu1 }
 0x214   :  { %v2264_v20 = vpop.f32.mrb[11].mxu1 }
 0x215   :  { %v1760_v21 = vadd.f32 %v2262_v16, %v1720_v13 }
 0x22c   :  { %v2282_v22 = vpop.f32.mrb[12].mxu0 }
 0x22d   :  { %v2283_v24 = vpop.f32.mrb[13].mxu0 }
 0x22e   :  { %v2284_v25 = vadd.f32 %v2283_v24, %v2282_v22  ;;  %v2285_v0 = vpop.f32.mrb[14].mxu0 }
 0x22f   :  { %v2286_v10 = vpop.f32.mrb[15].mxu0 }
 0x230   :  { %v1800_v9 = vadd.f32 %v2284_v25, %v1760_v21 }
 0x231   :  { %v2304_v28 = vpop.f32.mrb[12].mxu1 }
 0x232   :  { %v2305_v29 = vpop.f32.mrb[13].mxu1 }
 0x233   :  { %v2306_v18 = vadd.f32 %v2305_v29, %v2304_v28  ;;  %v2307_v31 = vpop.f32.mrb[14].mxu1 }
 0x234   :  { %v2308_v55 = vpop.f32.mrb[15].mxu1 }
 0x235   :  { %v1840_v34 = vadd.f32 %v2306_v18, %v1800_v9 }
 0x237   :  { %v1845_v35 = vmax.f32 %v1840_v34, 0.0 }
 0x239   :  { %v1846_v36 = vpack.c.bf16 %v1845_v35, %v1845_v35 }
 0x23b   :  { %2336 = vmatmul.mubr.bf16.vlgmr.msra.gmra.mrb[16].mxu0 %v1846_v36 }
 0x30e   :  { %v1949_v1 = vpop.f32.mrb[16].mxu0 }
 0x30f   :  { %v1950_v38 = vadd.f32 %v1949_v1, %v1866_v11  ;;  %v2337_v39 = vpop.f32.mrb[17].mxu0 }
 0x310   :  { %v1952_v40 = vpop.f32.mrb[18].mxu0 }
 0x311   :  { %1955 = vmax.xlane.f32.xlu1 %v1950_v38  ;;  %v2338_v41 = vpop.f32.mrb[19].mxu0 }
 0x39e   :  { %v1956_v43 = vpop.xlane.xlu1 %1955 }
 0x39f   :  { %v1957_v27 = vsub.f32 %v1950_v38, %v1956_v43 }
 0x3a1   :  { %v1958_v46 = vmul.f32 1.442695, %v1957_v27 }
 0x3a3   :  { %2554 = vpow2.f32 %v1958_v46 }
 0x3ad   :  { %v2555_v42 = vpop.eup %2554 }
 0x3ae   :  { %1960 = vadd.xlane.f32.xlu0 %v2555_v42 }
 0x43b   :  { %v1961_v32 = vpop.xlane.xlu0 %1960 }
 0x43c   :  { %2556 = vrcp.f32 %v1961_v32 }
 0x446   :  { %v2557_v49 = vpop.eup %2556 }
 0x447   :  { %v1963_v23 = vmul.f32 %v2557_v49, %v2555_v42 }
 0x449   :  { %1964 = vst [vmem:[#allocation12] sm:$0xff] %v1963_v23 }
 0x44a   :  { %2680 = shalt.err (!%p2677_p2)
}
 0x44b   :  { %s2681_s3 = scalar_lea.hbm %s3070_s5, 128 }
 0x44c   :  { %p2682_p3 = scmp.ne.s32.totalorder %s3070_s5, %s2681_s3  ;;  %p2685_p4 = scmp.lt.u32.totalorder %s2681_s3, %s3070_s5 }
 0x44e   :  { %p2687_p5 = pnand %p2685_p4, %p2682_p3 }
 0x450   :  { %2690 = shalt.err (!%p2687_p5)
}
 0x451   :  { %1974 = dma.vmem_to_hbm [thread:$0]  %s1972_s1, 128, %s3070_s5, [#allocation5]  }
 0x452   :  { %2697 = dma.done.wait [#allocation5], 128  }
 0x453   :  { %2698 = vsyncadd [#allocation5], 4294967168 }
 0x454   :  { %1978 = vsyncpa [#allocation4], 1 }
 0x455   :  { %1979 = vsyncpa [#allocation7], 1 }
 0x456   :  { %1980 = vsyncpa [#allocation10], 1 }
 0x457   :  { %1981 = vsyncpa [#allocation5], 1 }

</bundles_post_ra>
